<compile_context>
chip_gen: v7x
topology: tpu7x:2x2x1
jax: 0.10.0
libtpu: 0.0.40
codegen_flags: <defaults>
</compile_context>

<pallas_src>
import jax
import jax.numpy as jnp
import numpy as np
from jax.experimental import pallas as pl
from jax.experimental.pallas import tpu as pltpu


def _pad(v, m):
    return ((v + m - 1) // m) * m


def _live_bytes_per_step(bw, N, C, H, hd, out_bytes=4):
    """Rough per-grid-step VMEM footprint (with (8,128) padding)."""
    rows = bw * N
    sb_rows, sb_N = _pad(rows, 8), _pad(N, 8)
    ln_C, ln_3C = _pad(C, 128), _pad(3 * C, 128)
    ln_N, ln_hd = _pad(N, 128), _pad(hd, 128)
    b = 2 * sb_rows * ln_C * 2            # x tile (bf16), double-buffered
    b += 2 * sb_rows * ln_C * out_bytes   # out tile, double-buffered
    b += sb_rows * ln_3C * (4 + 2)        # fused qkv (f32 matmul result + bf16)
    b += 3 * bw * sb_N * ln_hd * 2        # q/k/v for ONE head (bf16)
    b += 2 * bw * sb_N * ln_N * 4         # scores + exp(scores) for ONE head (f32)
    b += bw * sb_N * ln_hd * 4            # o for one head (f32)
    b += sb_rows * ln_C * 2               # concatenated per-head outputs (bf16)
    b += sb_rows * ln_C * 4               # y (f32)
    return b


def _resident_bytes(C, nW, N):
    """VMEM held by grid-invariant operands (weights / biases / mask)."""
    b = _pad(C, 8) * _pad(3 * C, 128) * 2          # fused qkv weight (bf16)
    b += _pad(C, 8) * _pad(C, 128) * 2             # proj weight (bf16)
    b += 8 * _pad(3 * C, 128) * 4                  # fused qkv bias (f32)
    b += 8 * _pad(C, 128) * 4                      # proj bias (f32)
    b += nW * _pad(N, 8) * _pad(N, 128) * 4        # mask (f32)
    return 2 * b                                   # default double-buffering


def _choose_window_batch(B_, nW, N, C, H, hd, budget_bytes):
    """Largest multiple of nW dividing B_ that fits the VMEM budget; prefer
    >=4 grid steps (>=2 per TensorCore on v7x megacore), then >=2, then any."""
    cands = [m for m in range(nW, B_ + 1, nW) if B_ % m == 0]

    def pick(min_steps):
        sel = None
        for m in cands:
            if B_ // m >= min_steps and \
               _live_bytes_per_step(m, N, C, H, hd) <= budget_bytes:
                sel = m
        return sel

    return pick(4) or pick(2) or pick(1) or cands[0]


def _make_kernel(H):
    def kernel(x_ref, wqkv_ref, bqkv_ref, wp_ref, bp_ref, mask_ref, o_ref):
        bw, N, C = x_ref.shape
        nW = mask_ref.shape[0]
        hd = C // H
        rows = bw * N

        # ---- fused QKV projection: one full-width MXU matmul ----------------
        x = x_ref[...].reshape(rows, C)                                    # bf16
        qkv = jnp.dot(x, wqkv_ref[...], preferred_element_type=jnp.float32)
        qkv = (qkv + bqkv_ref[...]).astype(jnp.bfloat16)                   # (rows, 3C)
        # NOTE: softmax scale already folded into the q columns; key bias
        # dropped host-side (softmax-invariant -> exact).

        mask = mask_ref[...]                                               # (nW, N, N) f32

        outs = []
        for h in range(H):                                                 # static unroll
            q_h = qkv[:, 0 * C + h * hd:0 * C + (h + 1) * hd].reshape(bw, N, hd)
            k_h = qkv[:, 1 * C + h * hd:1 * C + (h + 1) * hd].reshape(bw, N, hd)
            v_h = qkv[:, 2 * C + h * hd:2 * C + (h + 1) * hd].reshape(bw, N, hd)

            s = jnp.einsum('wnd,wmd->wnm', q_h, k_h,
                           preferred_element_type=jnp.float32)             # (bw, N, N)
            # Swin additive mask: window j uses mask[j % nW]; add via
            # leading-dim reshape + implicit broadcast only.
            s = (s.reshape(bw // nW, nW, N, N) + mask).reshape(bw, N, N)

            # numerically-stable softmax, normalization deferred past PV
            m = jnp.max(s, axis=-1, keepdims=True)
            p = jnp.exp(s - m)
            denom = jnp.sum(p, axis=-1, keepdims=True)

            o_h = jnp.einsum('wnm,wmd->wnd', p.astype(jnp.bfloat16), v_h,
                             preferred_element_type=jnp.float32)           # (bw, N, hd)
            o_h = o_h * pl.reciprocal(denom, approx=True)                  # EUP slot
            outs.append(o_h.astype(jnp.bfloat16).reshape(rows, hd))

        # ---- output projection: one (rows, C) @ (C, C) matmul ---------------
        o_cat = jnp.concatenate(outs, axis=-1)                             # (rows, C) bf16
        y = jnp.dot(o_cat, wp_ref[...], preferred_element_type=jnp.float32)
        y = y + bp_ref[...]
        o_ref[...] = y.reshape(bw, N, C).astype(o_ref.dtype)
        # attn_drop / proj_drop are identity at inference (p = 0.0) -> omitted.

    return kernel


def window_attention(x, w_qkv, b_qkv, w_proj, b_proj, mask, *, num_heads):
    """x: (B_, N, C); w_qkv: (C, 3C); b_qkv: (1, 3C); w_proj: (C, C);
    b_proj: (1, C); mask: (nW, N, N).  Returns (B_, N, C) in x.dtype."""
    B_, N, C = x.shape
    nW = mask.shape[0]
    H = num_heads
    assert B_ % nW == 0 and C % H == 0
    hd = C // H
    scale = hd ** (-0.5)

    # ---- host-side (one-time) parameter preparation -------------------------
    # Fold the softmax scale into the q columns of the fused weight/bias and
    # drop the key bias (exactly equivalent after softmax).
    col_scale = jnp.concatenate(
        [jnp.full((C,), scale, jnp.float32), jnp.ones((2 * C,), jnp.float32)])
    w_fused = (w_qkv.astype(jnp.float32) * col_scale[None, :]).astype(jnp.bfloat16)
    b3 = b_qkv.reshape(3, C).astype(jnp.float32)
    b_fused = jnp.concatenate(
        [b3[0:1] * scale, jnp.zeros((1, C), jnp.float32), b3[2:3]],
        axis=0).reshape(1, 3 * C)

    wp = w_proj.astype(jnp.bfloat16)
    bp = b_proj.reshape(1, C).astype(jnp.float32)
    mask_f = mask.astype(jnp.float32)
    x_bf = x.astype(jnp.bfloat16)

    # ---- generation-aware tiling / VMEM limit --------------------------------
    try:
        vmem_cap = int(pltpu.get_tpu_info().vmem_capacity_bytes)
    except Exception:
        vmem_cap = 64 * 1024 * 1024            # conservative (v7x per-TC VMEM)
    out_bytes = np.dtype(x.dtype).itemsize
    resident = _resident_bytes(C, nW, N)
    budget = max(int(0.45 * vmem_cap) - resident, 4 * 1024 * 1024)
    bw = _choose_window_batch(B_, nW, N, C, H, hd, budget)
    need = _live_bytes_per_step(bw, N, C, H, hd, out_bytes) + resident
    vmem_limit = int(min(int(0.9 * vmem_cap),
                         max(32 * 1024 * 1024, int(1.5 * need))))

    grid = (B_ // bw,)
    const2 = lambda b: (0, 0)
    const3 = lambda b: (0, 0, 0)

    return pl.pallas_call(
        _make_kernel(H),
        out_shape=jax.ShapeDtypeStruct((B_, N, C), x.dtype),
        grid=grid,
        in_specs=[
            pl.BlockSpec((bw, N, C), lambda b: (b, 0, 0)),   # x: bw windows / step
            pl.BlockSpec((C, 3 * C), const2),                # fused qkv weight (VMEM-resident)
            pl.BlockSpec((1, 3 * C), const2),                # fused qkv bias
            pl.BlockSpec((C, C), const2),                    # proj weight
            pl.BlockSpec((1, C), const2),                    # proj bias
            pl.BlockSpec((nW, N, N), const3),                # mask (all windows)
        ],
        out_specs=pl.BlockSpec((bw, N, C), lambda b: (b, 0, 0)),
        compiler_params=pltpu.CompilerParams(
            dimension_semantics=("parallel",),
            vmem_limit_bytes=vmem_limit),
    )(x_bf, w_fused, b_fused, wp, bp, mask_f)


def reference(x, w_qkv, b_qkv, w_proj, b_proj, mask, *, num_heads):
    """Plain-JAX (f32) port of the PyTorch forward, for correctness checking."""
    B_, N, C = x.shape
    nW = mask.shape[0]
    hd = C // num_heads
    scale = hd ** (-0.5)
    qkv = (x @ w_qkv + b_qkv[0]).reshape(B_, N, 3, num_heads, hd)
    qkv = jnp.transpose(qkv, (2, 0, 3, 1, 4))
    q, k, v = qkv[0] * scale, qkv[1], qkv[2]
    attn = jnp.einsum('bhnd,bhmd->bhnm', q, k)
    attn = attn.reshape(B_ // nW, nW, num_heads, N, N) + mask[None, :, None]
    attn = attn.reshape(B_, num_heads, N, N)
    attn = jax.nn.softmax(attn, axis=-1)
    out = jnp.einsum('bhnm,bhmd->bhnd', attn, v)
    out = jnp.transpose(out, (0, 2, 1, 3)).reshape(B_, N, C)
    return out @ w_proj + b_proj[0]


if __name__ == "__main__":
    # Small shapes consistent with the module:
    #   dim=256, num_heads=2 (head_dim=128, lane-aligned head slices),
    #   window_size=4 -> N=16 tokens per window,
    #   batch=2 images, nW=4 windows each -> B_ = 8 windows total.
    dim, num_heads, window = 256, 2, 4
    N = window * window
    batch, nW = 2, 4
    B_ = batch * nW

    key = jax.random.PRNGKey(0)
    kx, kwq, kbq, kwp, kbp, km = jax.random.split(key, 6)

    x = jax.random.normal(kx, (B_, N, dim), dtype=jnp.float32)
    # Deterministic synthetic parameters (weights stored as (in, out)).
    w_qkv = jax.random.normal(kwq, (dim, 3 * dim), dtype=jnp.float32) * 0.05
    b_qkv = jax.random.normal(kbq, (1, 3 * dim), dtype=jnp.float32) * 0.01
    w_proj = jax.random.normal(kwp, (dim, dim), dtype=jnp.float32) * 0.05
    b_proj = jax.random.normal(kbp, (1, dim), dtype=jnp.float32) * 0.01
    # Swin-style additive attention mask: 0 where allowed, -100 where blocked.
    mask = jnp.where(jax.random.bernoulli(km, 0.8, (nW, N, N)), 0.0, -100.0)
    mask = mask.astype(jnp.float32)

    out = window_attention(x, w_qkv, b_qkv, w_proj, b_proj, mask,
                           num_heads=num_heads)
    out = jax.block_until_ready(out)

    ref = reference(x, w_qkv, b_qkv, w_proj, b_proj, mask, num_heads=num_heads)
    assert out.shape == (B_, N, dim)
    # bf16 matmul operands + approx reciprocal -> compare at 2e-2.
    np.testing.assert_allclose(np.asarray(out), np.asarray(ref),
                               atol=2e-2, rtol=2e-2)
    print("KERNEL_OK")
</pallas_src>

<mosaic_0001>
module attributes {stable_mosaic.version = 11 : i64} {
  func.func @kernel(%arg0: i32, %arg1: memref<4x16x256xbf16, #tpu.memory_space<vmem>>, %arg2: memref<256x768xbf16, #tpu.memory_space<vmem>>, %arg3: memref<1x768xf32, #tpu.memory_space<vmem>>, %arg4: memref<256x256xbf16, #tpu.memory_space<vmem>>, %arg5: memref<1x256xf32, #tpu.memory_space<vmem>>, %arg6: memref<4x16x16xf32, #tpu.memory_space<vmem>>, %arg7: memref<4x16x256xf32, #tpu.memory_space<vmem>>) attributes {dimension_semantics = [#tpu.dimension_semantics<parallel>], iteration_bounds = array<i64: 2>, scalar_prefetch = 0 : i64, scratch_operands = 0 : i64, tpu.core_type = #tpu.core_type<tc>, window_params = [{transform_indices = @transform_0, window_bounds = array<i64: 4, 16, 256>}, {pipeline_mode = #tpu.pipeline_mode<synchronous>, transform_indices = @transform_1, window_bounds = array<i64: 256, 768>}, {pipeline_mode = #tpu.pipeline_mode<synchronous>, transform_indices = @transform_2, window_bounds = array<i64: 1, 768>}, {pipeline_mode = #tpu.pipeline_mode<synchronous>, transform_indices = @transform_3, window_bounds = array<i64: 256, 256>}, {pipeline_mode = #tpu.pipeline_mode<synchronous>, transform_indices = @transform_4, window_bounds = array<i64: 1, 256>}, {pipeline_mode = #tpu.pipeline_mode<synchronous>, transform_indices = @transform_5, window_bounds = array<i64: 4, 16, 16>}, {transform_indices = @transform_6, window_bounds = array<i64: 4, 16, 256>}]} {
    %c0 = arith.constant 0 : index
    %c0_0 = arith.constant 0 : index
    %c0_1 = arith.constant 0 : index
    %0 = vector.load %arg1[%c0, %c0_0, %c0_1] : memref<4x16x256xbf16, #tpu.memory_space<vmem>>, vector<4x16x256xbf16>
    %1 = vector.shape_cast %0 : vector<4x16x256xbf16> to vector<64x256xbf16>
    %c0_2 = arith.constant 0 : index
    %c0_3 = arith.constant 0 : index
    %2 = vector.load %arg2[%c0_2, %c0_3] : memref<256x768xbf16, #tpu.memory_space<vmem>>, vector<256x768xbf16>
    %cst = arith.constant dense<0.000000e+00> : vector<64x768xf32>
    %3 = tpu.matmul %1, %2, %cst {dimension_numbers = #tpu.dot_dimension_numbers<[1], [0], [0], [1], [0, 0, 1, 1], [], []>} : vector<64x256xbf16>, vector<256x768xbf16>, vector<64x768xf32> -> vector<64x768xf32>
    %c0_4 = arith.constant 0 : index
    %c0_5 = arith.constant 0 : index
    %4 = vector.load %arg3[%c0_4, %c0_5] : memref<1x768xf32, #tpu.memory_space<vmem>>, vector<1x768xf32>
    %5 = vector.broadcast %4 : vector<1x768xf32> to vector<64x768xf32>
    %6 = arith.addf %3, %5 : vector<64x768xf32>
    %7 = arith.truncf %6 : vector<64x768xf32> to vector<64x768xbf16>
    %c0_6 = arith.constant 0 : index
    %c0_7 = arith.constant 0 : index
    %c0_8 = arith.constant 0 : index
    %8 = vector.load %arg6[%c0_6, %c0_7, %c0_8] : memref<4x16x16xf32, #tpu.memory_space<vmem>>, vector<4x16x16xf32>
    %9 = vector.extract_strided_slice %7 {offsets = [0, 0], sizes = [64, 128], strides = [1, 1]} : vector<64x768xbf16> to vector<64x128xbf16>
    %10 = vector.shape_cast %9 : vector<64x128xbf16> to vector<4x16x128xbf16>
    %11 = vector.extract_strided_slice %7 {offsets = [0, 256], sizes = [64, 128], strides = [1, 1]} : vector<64x768xbf16> to vector<64x128xbf16>
    %12 = vector.shape_cast %11 : vector<64x128xbf16> to vector<4x16x128xbf16>
    %13 = vector.extract_strided_slice %7 {offsets = [0, 512], sizes = [64, 128], strides = [1, 1]} : vector<64x768xbf16> to vector<64x128xbf16>
    %14 = vector.shape_cast %13 : vector<64x128xbf16> to vector<4x16x128xbf16>
    "tpu.trace_start"() <{level = 10 : i32, message = "wnd,wmd->wnm"}> : () -> ()
    %cst_9 = arith.constant dense<0.000000e+00> : vector<4x16x16xf32>
    %15 = tpu.matmul %10, %12, %cst_9 {dimension_numbers = #tpu.dot_dimension_numbers<[2], [2], [1], [1], [0, 0, 0, 1, 1, 1], [0], [0]>} : vector<4x16x128xbf16>, vector<4x16x128xbf16>, vector<4x16x16xf32> -> vector<4x16x16xf32>
    "tpu.trace_stop"() : () -> ()
    %16 = vector.shape_cast %15 : vector<4x16x16xf32> to vector<1x4x16x16xf32>
    %17 = vector.shape_cast %8 : vector<4x16x16xf32> to vector<1x4x16x16xf32>
    %18 = arith.addf %16, %17 : vector<1x4x16x16xf32>
    %19 = vector.shape_cast %18 : vector<1x4x16x16xf32> to vector<4x16x16xf32>
    %cst_10 = arith.constant dense<0xFF800000> : vector<4x16xf32>
    %20 = vector.multi_reduction <maximumf>, %19, %cst_10 [2] : vector<4x16x16xf32> to vector<4x16xf32>
    %21 = vector.shape_cast %20 : vector<4x16xf32> to vector<4x16x1xf32>
    %22 = vector.broadcast %21 : vector<4x16x1xf32> to vector<4x16x16xf32>
    %23 = arith.subf %19, %22 : vector<4x16x16xf32>
    %24 = math.exp %23 : vector<4x16x16xf32>
    %cst_11 = arith.constant dense<0.000000e+00> : vector<4x16xf32>
    %25 = vector.multi_reduction <add>, %24, %cst_11 [2] : vector<4x16x16xf32> to vector<4x16xf32>
    %26 = vector.shape_cast %25 : vector<4x16xf32> to vector<4x16x1xf32>
    %27 = arith.truncf %24 : vector<4x16x16xf32> to vector<4x16x16xbf16>
    "tpu.trace_start"() <{level = 10 : i32, message = "wnm,wmd->wnd"}> : () -> ()
    %cst_12 = arith.constant dense<0.000000e+00> : vector<4x16x128xf32>
    %28 = tpu.matmul %27, %14, %cst_12 {dimension_numbers = #tpu.dot_dimension_numbers<[2], [1], [1], [2], [0, 0, 0, 1, 1, 2], [0], [0]>} : vector<4x16x16xbf16>, vector<4x16x128xbf16>, vector<4x16x128xf32> -> vector<4x16x128xf32>
    "tpu.trace_stop"() : () -> ()
    %29 = tpu.reciprocal %26 {approx = true} : vector<4x16x1xf32> -> vector<4x16x1xf32>
    %30 = vector.broadcast %29 : vector<4x16x1xf32> to vector<4x16x128xf32>
    %31 = arith.mulf %28, %30 : vector<4x16x128xf32>
    %32 = arith.truncf %31 : vector<4x16x128xf32> to vector<4x16x128xbf16>
    %33 = vector.shape_cast %32 : vector<4x16x128xbf16> to vector<64x128xbf16>
    %34 = vector.extract_strided_slice %7 {offsets = [0, 128], sizes = [64, 128], strides = [1, 1]} : vector<64x768xbf16> to vector<64x128xbf16>
    %35 = vector.shape_cast %34 : vector<64x128xbf16> to vector<4x16x128xbf16>
    %36 = vector.extract_strided_slice %7 {offsets = [0, 384], sizes = [64, 128], strides = [1, 1]} : vector<64x768xbf16> to vector<64x128xbf16>
    %37 = vector.shape_cast %36 : vector<64x128xbf16> to vector<4x16x128xbf16>
    %38 = vector.extract_strided_slice %7 {offsets = [0, 640], sizes = [64, 128], strides = [1, 1]} : vector<64x768xbf16> to vector<64x128xbf16>
    %39 = vector.shape_cast %38 : vector<64x128xbf16> to vector<4x16x128xbf16>
    "tpu.trace_start"() <{level = 10 : i32, message = "wnd,wmd->wnm"}> : () -> ()
    %cst_13 = arith.constant dense<0.000000e+00> : vector<4x16x16xf32>
    %40 = tpu.matmul %35, %37, %cst_13 {dimension_numbers = #tpu.dot_dimension_numbers<[2], [2], [1], [1], [0, 0, 0, 1, 1, 1], [0], [0]>} : vector<4x16x128xbf16>, vector<4x16x128xbf16>, vector<4x16x16xf32> -> vector<4x16x16xf32>
    "tpu.trace_stop"() : () -> ()
    %41 = vector.shape_cast %40 : vector<4x16x16xf32> to vector<1x4x16x16xf32>
    %42 = vector.shape_cast %8 : vector<4x16x16xf32> to vector<1x4x16x16xf32>
    %43 = arith.addf %41, %42 : vector<1x4x16x16xf32>
    %44 = vector.shape_cast %43 : vector<1x4x16x16xf32> to vector<4x16x16xf32>
    %cst_14 = arith.constant dense<0xFF800000> : vector<4x16xf32>
    %45 = vector.multi_reduction <maximumf>, %44, %cst_14 [2] : vector<4x16x16xf32> to vector<4x16xf32>
    %46 = vector.shape_cast %45 : vector<4x16xf32> to vector<4x16x1xf32>
    %47 = vector.broadcast %46 : vector<4x16x1xf32> to vector<4x16x16xf32>
    %48 = arith.subf %44, %47 : vector<4x16x16xf32>
    %49 = math.exp %48 : vector<4x16x16xf32>
    %cst_15 = arith.constant dense<0.000000e+00> : vector<4x16xf32>
    %50 = vector.multi_reduction <add>, %49, %cst_15 [2] : vector<4x16x16xf32> to vector<4x16xf32>
    %51 = vector.shape_cast %50 : vector<4x16xf32> to vector<4x16x1xf32>
    %52 = arith.truncf %49 : vector<4x16x16xf32> to vector<4x16x16xbf16>
    "tpu.trace_start"() <{level = 10 : i32, message = "wnm,wmd->wnd"}> : () -> ()
    %cst_16 = arith.constant dense<0.000000e+00> : vector<4x16x128xf32>
    %53 = tpu.matmul %52, %39, %cst_16 {dimension_numbers = #tpu.dot_dimension_numbers<[2], [1], [1], [2], [0, 0, 0, 1, 1, 2], [0], [0]>} : vector<4x16x16xbf16>, vector<4x16x128xbf16>, vector<4x16x128xf32> -> vector<4x16x128xf32>
    "tpu.trace_stop"() : () -> ()
    %54 = tpu.reciprocal %51 {approx = true} : vector<4x16x1xf32> -> vector<4x16x1xf32>
    %55 = vector.broadcast %54 : vector<4x16x1xf32> to vector<4x16x128xf32>
    %56 = arith.mulf %53, %55 : vector<4x16x128xf32>
    %57 = arith.truncf %56 : vector<4x16x128xf32> to vector<4x16x128xbf16>
    %58 = vector.shape_cast %57 : vector<4x16x128xbf16> to vector<64x128xbf16>
    %59 = tpu.concatenate %33, %58 in 1 : vector<64x128xbf16>, vector<64x128xbf16> -> vector<64x256xbf16>
    %c0_17 = arith.constant 0 : index
    %c0_18 = arith.constant 0 : index
    %60 = vector.load %arg4[%c0_17, %c0_18] : memref<256x256xbf16, #tpu.memory_space<vmem>>, vector<256x256xbf16>
    %cst_19 = arith.constant dense<0.000000e+00> : vector<64x256xf32>
    %61 = tpu.matmul %59, %60, %cst_19 {dimension_numbers = #tpu.dot_dimension_numbers<[1], [0], [0], [1], [0, 0, 1, 1], [], []>} : vector<64x256xbf16>, vector<256x256xbf16>, vector<64x256xf32> -> vector<64x256xf32>
    %c0_20 = arith.constant 0 : index
    %c0_21 = arith.constant 0 : index
    %62 = vector.load %arg5[%c0_20, %c0_21] : memref<1x256xf32, #tpu.memory_space<vmem>>, vector<1x256xf32>
    %63 = vector.broadcast %62 : vector<1x256xf32> to vector<64x256xf32>
    %64 = arith.addf %61, %63 : vector<64x256xf32>
    %65 = vector.shape_cast %64 : vector<64x256xf32> to vector<4x16x256xf32>
    %c0_22 = arith.constant 0 : index
    %c0_23 = arith.constant 0 : index
    %c0_24 = arith.constant 0 : index
    %66 = vector.load %arg7[%c0_22, %c0_23, %c0_24] : memref<4x16x256xf32, #tpu.memory_space<vmem>>, vector<4x16x256xf32>
    tpu.vector_store %arg7[%c0_22, %c0_23, %c0_24], %65 {strides = array<i32>} : memref<4x16x256xf32, #tpu.memory_space<vmem>>, vector<4x16x256xf32>,
    return
  }
  func.func @transform_0(%arg0: i32) -> (i32, i32, i32) {
    %c0_i32 = arith.constant 0 : i32
    %c0_i32_0 = arith.constant 0 : i32
    %c0_i32_1 = arith.constant 0 : i32
    return %arg0, %c0_i32, %c0_i32_0 : i32, i32, i32
  }
  func.func @transform_1(%arg0: i32) -> (i32, i32) {
    %c0_i32 = arith.constant 0 : i32
    %c0_i32_0 = arith.constant 0 : i32
    %c0_i32_1 = arith.constant 0 : i32
    return %c0_i32, %c0_i32_0 : i32, i32
  }
  func.func @transform_2(%arg0: i32) -> (i32, i32) {
    %c0_i32 = arith.constant 0 : i32
    %c0_i32_0 = arith.constant 0 : i32
    %c0_i32_1 = arith.constant 0 : i32
    return %c0_i32, %c0_i32_0 : i32, i32
  }
  func.func @transform_3(%arg0: i32) -> (i32, i32) {
    %c0_i32 = arith.constant 0 : i32
    %c0_i32_0 = arith.constant 0 : i32
    %c0_i32_1 = arith.constant 0 : i32
    return %c0_i32, %c0_i32_0 : i32, i32
  }
  func.func @transform_4(%arg0: i32) -> (i32, i32) {
    %c0_i32 = arith.constant 0 : i32
    %c0_i32_0 = arith.constant 0 : i32
    %c0_i32_1 = arith.constant 0 : i32
    return %c0_i32, %c0_i32_0 : i32, i32
  }
  func.func @transform_5(%arg0: i32) -> (i32, i32, i32) {
    %c0_i32 = arith.constant 0 : i32
    %c0_i32_0 = arith.constant 0 : i32
    %c0_i32_1 = arith.constant 0 : i32
    %c0_i32_2 = arith.constant 0 : i32
    return %c0_i32, %c0_i32_0, %c0_i32_1 : i32, i32, i32
  }
  func.func @transform_6(%arg0: i32) -> (i32, i32, i32) {
    %c0_i32 = arith.constant 0 : i32
    %c0_i32_0 = arith.constant 0 : i32
    %c0_i32_1 = arith.constant 0 : i32
    return %arg0, %c0_i32, %c0_i32_0 : i32, i32, i32
  }
}

</mosaic_0001>

<bundles_post_ra>
// kernel: tpu_custom_call.1
= control target key start
LH: loop header
LB: loop body
LE: loop exit
PB: predicated region body
PF: predicated region fallthrough
CT: control target
= control target key end

     0   :  { %s4109_s0 = inlined_call_operand.hbm [shape: bf16[8,16,256], index: 0, kind: input, shape index: {}]   ;;  %s4110_s1 = inlined_call_operand.hbm [shape: bf16[256,768], index: 1, kind: input, shape index: {}]   ;;  %s4111_s2 = inlined_call_operand.vmem [shape: f32[1,768], index: 2, kind: input, shape index: {}]   ;;  %s4112_s3 = inlined_call_operand.hbm [shape: bf16[256,256], index: 3, kind: input, shape index: {}]   ;;  %s4113_s4 = inlined_call_operand.vmem [shape: f32[1,256], index: 4, kind: input, shape index: {}]   ;;  %s4114_s5 = inlined_call_operand.hbm [shape: f32[4,16,16], index: 5, kind: input, shape index: {}]   ;;  %s4115_s6 = inlined_call_operand.hbm [shape: f32[8,16,256], index: 6, kind: output, shape index: {}]  }
   0x1   :  { %4121 = sst [smem:[#allocation15_spill]] %s4110_s1 }
   0x2   :  { %11 = vsyncpa [#allocation3], 0 }
   0x3   :  { %13 = vsyncpa [#allocation3 + $0x1], 0 }
   0x4   :  { %14 = vsyncpa [#allocation6], 0 }
   0x5   :  { %15 = vsyncpa [#allocation9], 0 }
   0x6   :  { %16 = vsyncpa [#allocation4], 0 }
   0x7   :  { %18 = vsyncpa [#allocation4 + $0x1], 0  ;;  %s3413_s21 = smov 0   ;;  %s3415_s22 = smov 0  }
   0x8   :  { %s3417_s23 = smov 0   ;;  %s3419_s24 = smov 0  }
   0x9 LB: > { %s3434_s25 = sadd.s32 4294967295, %s3363_s24   ;;  %s2524_s26 = sadd.s32 4294967294, %s3363_s24   ;;  %s3363_s24 = sphi %s3419_s24, %s4144_s24   ;;  %s3359_s23 = sphi %s3417_s23, %s4143_s23   ;;  %s3355_s22 = sphi %s3415_s22, %s4142_s22   ;;  %s3351_s21 = sphi %s3413_s21, %s4141_s21  }
   0xa   : > { %p44_p0 = scmp.ne.s32.totalorder %s3355_s22, %s3351_s21  ;;  %p4116_p1 = scmp.eq.s32.totalorder %s3434_s25, 0 }
   0xb   : > { %p179_p3 = scmp.eq.s32.totalorder %s2524_s26, 1  ;;  %p2525_p5 = scmp.ge.s32.totalorder %s3363_s24, 1 }
   0xc   : > { %p3443_p4 = por %p4116_p1, %p44_p0  ;;  %p186_p7 = scmp.lt.s32.totalorder %s3363_s24, 3 }
   0xd   : > { %p3448_p6 = por %p179_p3, %p44_p0  ;;  %s3365_s30 = smov [#allocation5]  }
   0xe   : > { %s4122_s27 = scalar_select %p3443_p4, 1, 0 }
   0xf   : > { %s4123_s28 = scalar_select %p3448_p6, 1, 0 }
  0x10   : > { %p3453_p8 = pnand %p2525_p5, %p186_p7  ;;  %s198_s7 = sshll.u32 %s3365_s30, 4  ;;  %s3457_s7 = int_to_ptr.vmem [resolvable:$true] %s198_s7 }
  0x11   : > { %s3366_s9 = smov [#allocation7]   ;;  %s4126_s1 = sld [smem:[#allocation15_spill]] }
  0x12   : > { %s4124_s29 = scalar_select %p3453_p8, 1, 0 }
  0x13   : > { %p2838_p9 = pneg %p3453_p8  ;;  %s214_s10 = sshll.u32 %s3366_s9, 4  ;;  %s3468_s10 = int_to_ptr.vmem [resolvable:$true] %s214_s10 }
  0x15   : > { %p3464_p11 = pnand %p2838_p9, %p4116_p1 }
  0x17   : > { %s3175_s13 = scalar_lea.hbm %s4126_s1, 12288  ;;  %p3478_p13 = pneg %p3464_p11 }
  0x18   : > { %p3176_p12 = scmp.ne.s32.totalorder %s4126_s1, %s3175_s13  ;;  %p3182_p5 = scmp.lt.u32.totalorder %s3175_s13, %s4126_s1 }
  0x1a   : > { %p3178_p0 = pnand %p3478_p13, %p3176_p12 }
  0x1c   : > { %p3179_p3 = pneg %p3178_p0 }
  0x1e   : > { %p3184_p7 = pnand %p3182_p5, %p3179_p3 }
  0x20   : > { %3187 = shalt.err (!%p3184_p7)
}
  0x21   : > { %s3188_s19 = scalar_lea.vmem %s3457_s7, 12288  ;;  %p3196_p2 = scmp.lt.s32.totalorder %s3457_s7, %s3457_s7 }
  0x22   : > { %p3189_p9 = scmp.ne.s32.totalorder %s3457_s7, %s3188_s19  ;;  %p3197_p6 = scmp.lt.s32.totalorder %s3188_s19, %s3188_s19 }
  0x24   : > { %p3191_p10 = pnand %p3189_p9, %p3478_p13  ;;  %p3198_p12 = por %p3197_p6, %p3196_p2 }
  0x26   : > { %p3192_p1 = pneg %p3191_p10 }
  0x28   : > { %p3199_p0 = pnand %p3198_p12, %p3192_p1 }
  0x2a   : > { %3202 = shalt.err (!%p3199_p0)
}
  0x2b   : > { %s3367_s20 = smov 384   ;;  %s3368_s26 = smov 24  }
  0x2c   : > { %2841 = dma.hbm_to_vmem [thread:$0]  (!%p3464_p11), %s4126_s1, 12288, %s3457_s7, [#allocation6], %s3367_s20, %s3367_s20, %s3368_s26  }
  0x2d   : > { %s3203_s13 = scalar_lea.hbm %s4112_s3, 4096 }
  0x2e   : > { %p3204_p2 = scmp.ne.s32.totalorder %s4112_s3, %s3203_s13  ;;  %p3210_p10 = scmp.lt.u32.totalorder %s3203_s13, %s4112_s3 }
  0x30   : > { %p3206_p1 = pnand %p3204_p2, %p3478_p13 }
  0x32   : > { %p3207_p6 = pneg %p3206_p1 }
  0x34   : > { %p3212_p3 = pnand %p3210_p10, %p3207_p6 }
  0x36   : > { %3215 = shalt.err (!%p3212_p3)
}
  0x37   : > { %s3216_s7 = scalar_lea.vmem %s3468_s10, 4096  ;;  %p3224_p12 = scmp.lt.s32.totalorder %s3468_s10, %s3468_s10 }
  0x38   : > { %p3217_p5 = scmp.ne.s32.totalorder %s3468_s10, %s3216_s7  ;;  %p3225_p0 = scmp.lt.s32.totalorder %s3216_s7, %s3216_s7 }
  0x3a   : > { %p3219_p7 = pnand %p3217_p5, %p3478_p13  ;;  %p3226_p2 = por %p3225_p0, %p3224_p12 }
  0x3c   : > { %p3220_p9 = pneg %p3219_p7 }
  0x3e   : > { %p3227_p1 = pnand %p3226_p2, %p3220_p9 }
  0x40   : > { %3230 = shalt.err (!%p3227_p1)
}
  0x41   : > { %s3369_s19 = smov 128   ;;  %s3370_s20 = smov 8  }
  0x42   : > { %2844 = dma.hbm_to_vmem [thread:$0]  (!%p3464_p11), %s4112_s3, 4096, %s3468_s10, [#allocation6], %s3369_s19, %s3369_s19, %s3370_s20  }
  0x43   : > { %s3371_s9 = smov [#allocation8]   ;;  %s3526_s12 = sadd.s32 1, %s3363_s24  }
  0x44   : > { %s230_s11 = sshll.u32 %s3371_s9, 4  ;;  %s3231_s15 = scalar_lea.hbm %s4114_s5, 1024  ;;  %s231_s11 = int_to_ptr.vmem [resolvable:$true] %s230_s11 }
  0x45   : > { %p3232_p6 = scmp.ne.s32.totalorder %s4114_s5, %s3231_s15  ;;  %p3238_p5 = scmp.lt.u32.totalorder %s3231_s15, %s4114_s5 }
  0x47   : > { %p3234_p10 = pnand %p3232_p6, %p3478_p13 }
  0x49   : > { %p3235_p3 = pneg %p3234_p10 }
  0x4b   : > { %p3240_p7 = pnand %p3238_p5, %p3235_p3 }
  0x4d   : > { %3243 = shalt.err (!%p3240_p7)
}
  0x4e   : > { %s3244_s10 = scalar_lea.vmem %s231_s11, 1024  ;;  %p3252_p2 = scmp.lt.s32.totalorder %s231_s11, %s231_s11 }
  0x4f   : > { %p3245_p9 = scmp.ne.s32.totalorder %s231_s11, %s3244_s10  ;;  %p3253_p1 = scmp.lt.s32.totalorder %s3244_s10, %s3244_s10 }
  0x51   : > { %p3247_p12 = pnand %p3245_p9, %p3478_p13  ;;  %p3254_p4 = por %p3253_p1, %p3252_p2 }
  0x53   : > { %p3248_p0 = pneg %p3247_p12 }
  0x55   : > { %p3255_p8 = pnand %p3254_p4, %p3248_p0 }
  0x57   : > { %3258 = shalt.err (!%p3255_p8)
}
  0x58   : > { %2847 = dma.hbm_to_vmem [thread:$0]  (!%p3464_p11), %s4114_s5, 1024, %s231_s11, [#allocation9], %s3369_s19, %s3369_s19, %s3370_s20  }
  0x59   : > { %s28_s16 = ssub.s32 %s3363_s24, %s3526_s12  ;;  %s31_s8 = sadd.s32 1, %s3359_s23 }
  0x5a   : > { %p29_p4 = scmp.eq.s32.totalorder %s28_s16, 0  ;;  %p38_p8 = scmp.ne.s32.totalorder %s3359_s23, %s3355_s22 }
  0x5b   : > { %p39_p13 = scmp.eq.s32.totalorder %s3363_s24, 0  ;;  %p2859_p6 = scmp.lt.s32.totalorder %s3363_s24, 2 }
  0x5c   : > { %s3557_s30 = scalar_select %p29_p4, %s3359_s23, %s31_s8  }
  0x5d   : > { %p40_p10 = por %p39_p13, %p38_p8  ;;  %p4128_p3 = scmp.eq.s32.totalorder %s3434_s25, 1 }
  0x5e   : > { %s244_s13 = sand.u32 1, %s3359_s23   ;;  %s2691_s14 = sshll.u32 %s3363_s24, 10 }
  0x5f   : > { %p3561_p5 = por %p4128_p3, %p38_p8  ;;  %s2530_s15 = sshll.u32 %s244_s13, 6 }
  0x60   : > { %s3570_s11 = scalar_lea.hbm %s4109_s0, %s2691_s14  ;;  %s248_s7 = scalar_lea.vmem [#allocation2], %s2530_s15 }
  0x61   : > { %s256_s10 = sshll.u32 %s248_s7, 4  ;;  %p3572_p11 = pnand %p2859_p6, %p40_p10  ;;  %s3576_s10 = int_to_ptr.vmem [resolvable:$true] %s256_s10 }
  0x62   : > { %s3578_s26 = scalar_lea.sflag [#allocation3], %s244_s13  ;;  %s3259_s16 = scalar_lea.hbm %s3570_s11, 1024 }
  0x63   : > { %p3260_p7 = scmp.ne.s32.totalorder %s3570_s11, %s3259_s16  ;;  %p3261_p9 = pneg %p3572_p11 }
  0x64   : > { %s3264_s15 = scalar_lea.hbm %s4109_s0, 2048  ;;  %p3265_p2 = scmp.lt.u32.totalorder %s3570_s11, %s4109_s0 }
  0x65   : > { %p3262_p12 = pnand %p3261_p9, %p3260_p7  ;;  %p3266_p1 = scmp.lt.u32.totalorder %s3264_s15, %s3259_s16 }
  0x66   : > { %p3268_p8 = scmp.lt.u32.totalorder %s3259_s16, %s3570_s11 }
  0x67   : > { %p3263_p0 = pneg %p3262_p12  ;;  %p3267_p4 = por %p3266_p1, %p3265_p2 }
  0x69   : > { %p3269_p13 = por %p3268_p8, %p3267_p4 }
  0x6b   : > { %p3270_p6 = pnand %p3269_p13, %p3263_p0 }
  0x6d   : > { %3273 = shalt.err (!%p3270_p6)
}
  0x6e   : > { %s3274_s13 = scalar_lea.vmem %s3576_s10, 1024  ;;  %s3372_s7 = smov [#allocation2]  }
  0x6f   : > { %p3275_p10 = scmp.ne.s32.totalorder %s3576_s10, %s3274_s13  ;;  %s3279_s8 = sshll.u32 %s3372_s7, 4  ;;  %s3280_s8 = int_to_ptr.vmem [resolvable:$false] %s3279_s8 }
  0x70   : > { %s3281_s14 = scalar_lea.vmem %s3280_s8, 2048  ;;  %p3282_p12 = scmp.lt.s32.totalorder %s3576_s10, %s3280_s8 }
  0x71   : > { %p3277_p3 = pnand %p3275_p10, %p3261_p9  ;;  %p3283_p2 = scmp.lt.s32.totalorder %s3281_s14, %s3274_s13 }
  0x73   : > { %p3278_p7 = pneg %p3277_p3  ;;  %p3284_p1 = por %p3283_p2, %p3282_p12 }
  0x75   : > { %p3285_p4 = pnand %p3284_p1, %p3278_p7 }
  0x77   : > { %3288 = shalt.err (!%p3285_p4)
}
  0x78   : > { %2851 = dma.hbm_to_vmem [thread:$0]  (!%p3572_p11), %s3570_s11, 1024, %s3576_s10, %s3578_s26, %s3369_s19, %s3369_s19, %s3370_s20  }
  0x79   : > { %p4131_p9 = scmp.ne.s32.totalorder %s4124_s29, 0 }
  0x7a   : > { %s3612_s16 = sand.u32 (!%p4131_p9), 1, %s3355_s22   ;;  %p4132_p0 = scmp.ne.s32.totalorder (!%p4131_p9), %s4122_s27, 0 }
  0x7b   : > { %268 = sbr.rel (%p4131_p9) target bundleno = 1746 (0x6d2), region = 44  ;;  %s2535_s15 = sshll.u32 (!%p4131_p9), %s3612_s16, 6 }
  0x7c   : > { %s271_s17 = scalar_lea.sflag (!%p4131_p9), [#allocation3], %s3612_s16  ;;  %s3616_s18 = scalar_lea.vmem (!%p4131_p9), [#allocation2], %s2535_s15 }
  0x82   : > { %3334 = dma.done.wait (%p4132_p0), %s271_s17, 1024  }
  0x83   : > { %3336 = vsyncadd (%p4132_p0), %s271_s17, 4294966272  ;;  %p4133_p11 = scmp.eq.s32.totalorder %s3434_s25, 0 }
  0x85   : > { %3338 = dma.done.wait (%p4133_p11), [#allocation6], 16384   ;;  %p4134_p8 = pmov %p4133_p11 }
  0x87   : > { %3340 = vsyncadd (%p4134_p8), [#allocation6], 4294950912  ;;  %p4135_p13 = pmov %p4134_p8 }
  0x88   : > { %p4136_p6 = pmov %p4134_p8 }
  0x89   : > { %3342 = dma.done.wait (%p4135_p13), [#allocation9], 1024  }
  0x8a   : > { %3344 = vsyncadd (%p4136_p6), [#allocation9], 4294966272  ;;  %v2907_v0 = vld [vmem:[#allocation5 + $0x4] ss:$24 sps:$4 sm:$0xff]   ;;  %v2909_v1 = vld [vmem:[#allocation5] ss:$24 sps:$4 sm:$0xff]  }
  0x8b   : > { %974 = vmatprep.subr.bf16.mxu1 %v2907_v0  ;;  %v2910_v2 = vld [vmem:[#allocation5 + $0x34] ss:$24 sps:$4 sm:$0xff]   ;;  %v2912_v3 = vld [vmem:[#allocation5 + $0x30] ss:$24 sps:$4 sm:$0xff]   ;;  %v2913_v4 = vld [vmem:[#allocation5 + $0x64] ss:$24 sps:$4 sm:$0xff]  }
  0x8c   : > { %975 = vmatpush1.bf16.msra.mxu1 %v2909_v1  ;;  %v2915_v5 = vld [vmem:[#allocation5 + $0x60] ss:$24 sps:$4 sm:$0xff]   ;;  %v2916_v6 = vld [vmem:[#allocation5 + $0x94] ss:$24 sps:$4 sm:$0xff]   ;;  %v2918_v7 = vld [vmem:[#allocation5 + $0x90] ss:$24 sps:$4 sm:$0xff]  }
  0x8d   : > { %976 = vmatprep.subr.bf16.mxu1 %v2910_v2  ;;  %v2919_v8 = vld [vmem:[#allocation5 + $0xc4] ss:$24 sps:$4 sm:$0xff]   ;;  %v2921_v9 = vld [vmem:[#allocation5 + $0xc0] ss:$24 sps:$4 sm:$0xff]   ;;  %v2922_v10 = vld [vmem:[#allocation5 + $0xf4] ss:$24 sps:$4 sm:$0xff]  }
  0x8e   : > { %v2924_v11 = vld [vmem:[#allocation5 + $0xf0] ss:$24 sps:$4 sm:$0xff]   ;;  %v2925_v12 = vld [vmem:[#allocation5 + $0x124] ss:$24 sps:$4 sm:$0xff]   ;;  %v2927_v14 = vld [vmem:[#allocation5 + $0x120] ss:$24 sps:$4 sm:$0xff]  }
  0x8f   : > { %v3631_v13 = vld [vmem:[%s3616_s18 + $0x4] ss:$8 sps:$4 sm:$0xff]   ;;  %v2930_v16 = vld [vmem:[#allocation5 + $0x150] ss:$24 sps:$4 sm:$0xff]   ;;  %v2933_v18 = vld [vmem:[#allocation5 + $0x180] ss:$24 sps:$4 sm:$0xff]  }
  0x90   : > { %977 = vmatpush1.bf16.msra.mxu1 %v2912_v3  ;;  %v2928_v15 = vld [vmem:[#allocation5 + $0x154] ss:$24 sps:$4 sm:$0xff]   ;;  %1006 = vmatprep.mubr.bf16.mxu1 %v3631_v13  ;;  %v2931_v17 = vld [vmem:[#allocation5 + $0x184] ss:$24 sps:$4 sm:$0xff]   ;;  %v2936_v20 = vld [vmem:[#allocation5 + $0x1b0] ss:$24 sps:$4 sm:$0xff]  }
  0x91   : > { %978 = vmatprep.subr.bf16.mxu1 %v2913_v4  ;;  %1152 = vmatprep.mubr.bf16.mxu0 %v3631_v13  ;;  %v2934_v19 = vld [vmem:[#allocation5 + $0x1b4] ss:$24 sps:$4 sm:$0xff]   ;;  %v2937_v21 = vld [vmem:[#allocation5 + $0x1e4] ss:$24 sps:$4 sm:$0xff]   ;;  %v2939_v22 = vld [vmem:[#allocation5 + $0x1e0] ss:$24 sps:$4 sm:$0xff]  }
  0x92   : > { %v2940_v23 = vld [vmem:[#allocation5 + $0x214] ss:$24 sps:$4 sm:$0xff]   ;;  %v2942_v24 = vld [vmem:[#allocation5 + $0x210] ss:$24 sps:$4 sm:$0xff]   ;;  %v2943_v25 = vld [vmem:[#allocation5 + $0x244] ss:$24 sps:$4 sm:$0xff]  }
  0x93   : > { %v2945_v26 = vld [vmem:[#allocation5 + $0x240] ss:$24 sps:$4 sm:$0xff]   ;;  %v2946_v27 = vld [vmem:[#allocation5 + $0x274] ss:$24 sps:$4 sm:$0xff]   ;;  %v3017_v29 = vld [vmem:[#allocation5 + $0x10] ss:$24 sps:$4 sm:$0xff]  }
  0x94   : > { %979 = vmatpush1.bf16.msra.mxu1 %v2915_v5  ;;  %v3015_v28 = vld [vmem:[#allocation5 + $0x14] ss:$24 sps:$4 sm:$0xff]   ;;  %v2948_v30 = vld [vmem:[#allocation5 + $0x270] ss:$24 sps:$4 sm:$0xff]   ;;  %v3018_v31 = vld [vmem:[#allocation5 + $0x44] ss:$24 sps:$4 sm:$0xff]  }
  0x95   : > { %980 = vmatprep.subr.bf16.mxu1 %v2916_v6  ;;  %1120 = vmatprep.subr.bf16.mxu0 %v3015_v28  ;;  %v2949_v32 = vld [vmem:[#allocation5 + $0x2a4] ss:$24 sps:$4 sm:$0xff]   ;;  %v3020_v33 = vld [vmem:[#allocation5 + $0x40] ss:$24 sps:$4 sm:$0xff]   ;;  %v3021_v34 = vld [vmem:[#allocation5 + $0x74] ss:$24 sps:$4 sm:$0xff]  }
  0x96   : > { %1121 = vmatpush1.bf16.msra.mxu0 %v3017_v29  ;;  %v2951_v35 = vld [vmem:[#allocation5 + $0x2a0] ss:$24 sps:$4 sm:$0xff]   ;;  %v2952_v36 = vld [vmem:[#allocation5 + $0x2d4] ss:$24 sps:$4 sm:$0xff]   ;;  %v3023_v37 = vld [vmem:[#allocation5 + $0x70] ss:$24 sps:$4 sm:$0xff]  }
  0x97   : > { %1122 = vmatprep.subr.bf16.mxu0 %v3018_v31  ;;  %v3024_v38 = vld [vmem:[#allocation5 + $0xa4] ss:$24 sps:$4 sm:$0xff]   ;;  %v2954_v39 = vld [vmem:[#allocation5 + $0x2d0] ss:$24 sps:$4 sm:$0xff]   ;;  %v3026_v40 = vld [vmem:[#allocation5 + $0xa0] ss:$24 sps:$4 sm:$0xff]  }
  0x98   : > { %981 = vmatpush1.bf16.msra.mxu1 %v2918_v7  ;;  %v2960_v41 = vld [vmem:[#allocation5 + $0xc] ss:$24 sps:$4 sm:$0xff]   ;;  %v3636_v43 = vld [vmem:[%s3616_s18] ss:$8 sps:$4 sm:$0xff]   ;;  %v3639_v45 = vld [vmem:[%s3616_s18 + $0x14] ss:$8 sps:$4 sm:$0xff]  }
  0x99   : > { %982 = vmatprep.subr.bf16.mxu1 %v2919_v8  ;;  %v3027_v42 = vld [vmem:[#allocation5 + $0xd4] ss:$24 sps:$4 sm:$0xff]   ;;  %v2958_v44 = vld [vmem:[#allocation5 + $0x8] ss:$24 sps:$4 sm:$0xff]   ;;  %v2961_v48 = vld [vmem:[#allocation5 + $0x38] ss:$24 sps:$4 sm:$0xff]  }
  0x9a   : > { %1123 = vmatpush1.bf16.msra.mxu0 %v3020_v33  ;;  %v2963_v46 = vld [vmem:[#allocation5 + $0x3c] ss:$24 sps:$4 sm:$0xff]   ;;  %v3029_v47 = vld [vmem:[#allocation5 + $0xd0] ss:$24 sps:$4 sm:$0xff]   ;;  %v2966_v49 = vld [vmem:[#allocation5 + $0x6c] ss:$24 sps:$4 sm:$0xff]  }
  0x9b   : > { %1124 = vmatprep.subr.bf16.mxu0 %v3021_v34  ;;  %v3644_v50 = vld [vmem:[%s3616_s18 + $0x10] ss:$8 sps:$4 sm:$0xff]   ;;  %v2964_v51 = vld [vmem:[#allocation5 + $0x68] ss:$24 sps:$4 sm:$0xff]   ;;  %v3647_v52 = vld [vmem:[%s3616_s18 + $0x24] ss:$8 sps:$4 sm:$0xff]  }
  0x9c   : > { %983 = vmatpush1.bf16.msra.mxu1 %v2921_v9  ;;  %v2969_v53 = vld [vmem:[#allocation5 + $0x9c] ss:$24 sps:$4 sm:$0xff]   ;;  %v2967_v54 = vld [vmem:[#allocation5 + $0x98] ss:$24 sps:$4 sm:$0xff]   ;;  %v2972_v55 = vld [vmem:[#allocation5 + $0xcc] ss:$24 sps:$4 sm:$0xff]  }
  0x9d   : > { %984 = vmatprep.subr.bf16.mxu1 %v2922_v10  ;;  %v3652_v56 = vld [vmem:[%s3616_s18 + $0x20] ss:$8 sps:$4 sm:$0xff]   ;;  %v3655_v58 = vld [vmem:[%s3616_s18 + $0x34] ss:$8 sps:$4 sm:$0xff]   ;;  %v2973_v60 = vld [vmem:[#allocation5 + $0xf8] ss:$24 sps:$4 sm:$0xff]  }
  0x9e   : > { %1125 = vmatpush1.bf16.msra.mxu0 %v3023_v37  ;;  %v2970_v57 = vld [vmem:[#allocation5 + $0xc8] ss:$24 sps:$4 sm:$0xff]   ;;  %v2975_v59 = vld [vmem:[#allocation5 + $0xfc] ss:$24 sps:$4 sm:$0xff]   ;;  %v2978_v61 = vld [vmem:[#allocation5 + $0x12c] ss:$24 sps:$4 sm:$0xff]  }
  0x9f   : > { %1126 = vmatprep.subr.bf16.mxu0 %v3024_v38  ;;  %v3660_v62 = vld [vmem:[%s3616_s18 + $0x30] ss:$8 sps:$4 sm:$0xff]   ;;  %v2976_v63 = vld [vmem:[#allocation5 + $0x128] ss:$24 sps:$4 sm:$0xff]   ;;  %v2981_v0 = vld [vmem:[#allocation5 + $0x15c] ss:$24 sps:$4 sm:$0xff]  }
  0xa0   : > { %985 = vmatpush1.bf16.msra.mxu1 %v2924_v11  ;;  %v2979_v1 = vld [vmem:[#allocation5 + $0x158] ss:$24 sps:$4 sm:$0xff]   ;;  %v2984_v2 = vld [vmem:[#allocation5 + $0x18c] ss:$24 sps:$4 sm:$0xff]   ;;  %v2982_v3 = vld [vmem:[#allocation5 + $0x188] ss:$24 sps:$4 sm:$0xff]  }
  0xa1   : > { %986 = vmatprep.subr.bf16.mxu1 %v2925_v12  ;;  %v2989_v4 = vld [vmem:[#allocation5 + $0x1bc] ss:$24 sps:$4 sm:$0xff]   ;;  %v2987_v5 = vld [vmem:[#allocation5 + $0x1b8] ss:$24 sps:$4 sm:$0xff]   ;;  %v2993_v6 = vld [vmem:[#allocation5 + $0x1ec] ss:$24 sps:$4 sm:$0xff]  }
  0xa2   : > { %1127 = vmatpush1.bf16.msra.mxu0 %v3026_v40  ;;  %v2991_v7 = vld [vmem:[#allocation5 + $0x1e8] ss:$24 sps:$4 sm:$0xff]   ;;  %v2998_v8 = vld [vmem:[#allocation5 + $0x21c] ss:$24 sps:$4 sm:$0xff]   ;;  %v2996_v9 = vld [vmem:[#allocation5 + $0x218] ss:$24 sps:$4 sm:$0xff]  }
  0xa3   : > { %1128 = vmatprep.subr.bf16.mxu0 %v3027_v42  ;;  %v3002_v10 = vld [vmem:[#allocation5 + $0x24c] ss:$24 sps:$4 sm:$0xff]   ;;  %v3000_v11 = vld [vmem:[#allocation5 + $0x248] ss:$24 sps:$4 sm:$0xff]   ;;  %v3007_v12 = vld [vmem:[#allocation5 + $0x27c] ss:$24 sps:$4 sm:$0xff]  }
  0xa4   : > { %987 = vmatpush1.bf16.msra.mxu1 %v2927_v14  ;;  %v3011_v14 = vld [vmem:[#allocation5 + $0x2ac] ss:$24 sps:$4 sm:$0xff]   ;;  %v3047_v29 = vld [vmem:[#allocation5 + $0x1f0] ss:$24 sps:$4 sm:$0xff]   ;;  %v3050_v31 = vld [vmem:[#allocation5 + $0x220] ss:$24 sps:$4 sm:$0xff]  }
  0xa5   : > { %988 = vmatprep.subr.bf16.mxu1 %v2928_v15  ;;  %v3009_v15 = vld [vmem:[#allocation5 + $0x2a8] ss:$24 sps:$4 sm:$0xff]   ;;  %v3045_v28 = vld [vmem:[#allocation5 + $0x1f4] ss:$24 sps:$4 sm:$0xff]   ;;  %v3054_v34 = vld [vmem:[#allocation5 + $0x284] ss:$24 sps:$4 sm:$0xff]  }
  0xa6   : > { %1129 = vmatpush1.bf16.msra.mxu0 %v3029_v47  ;;  %v3053_v33 = vld [vmem:[#allocation5 + $0x250] ss:$24 sps:$4 sm:$0xff]   ;;  %v3060_v38 = vld [vmem:[#allocation5 + $0x2e4] ss:$24 sps:$4 sm:$0xff]   ;;  %v3373_v40 = vmov 0.0   ;;  %vm3374_vm0 = vmmov 0  }
  0xa7   : > { %v3059_v37 = vld [vmem:[#allocation5 + $0x2b0] ss:$24 sps:$4 sm:$0xff]   ;;  %vm1397_vm1 = vcmask 130048   ;;  %s2539_s11 = sshll.u32 %s3612_s16, 7  ;;  %s2693_s1 = sshll.u32 %s3434_s25, 11 }
  0xa8   : > { %989 = vmatpush1.bf16.msra.mxu1 %v2930_v16  ;;  %v3014_v16 = vld [vmem:[#allocation5 + $0x2dc] ss:$24 sps:$4 sm:$0xff]   ;;  %s4040_s10 = scalar_lea.vmem [#allocation10], %s2539_s11  ;;  %s4060_s8 = scalar_lea.hbm %s4115_s6, %s2693_s1 }
  0xa9   : > { %990 = vmatprep.subr.bf16.mxu1 %v2931_v17  ;;  %v3012_v17 = vld [vmem:[#allocation5 + $0x2d8] ss:$24 sps:$4 sm:$0xff]   ;;  %s2422_s26 = sshll.u32 %s4040_s10, 4  ;;  %s2408_s25 = scalar_lea.sflag [#allocation4], %s3612_s16  ;;  %s4062_s26 = int_to_ptr.vmem [resolvable:$true] %s2422_s26 }
  0xaa   : > { %s3289_s14 = scalar_lea.vmem %s4062_s26, 2048  ;;  %s3375_s15 = smov [#allocation10]  }
  0xab   : > { %p3290_p10 = scmp.ne.s32.totalorder %s4062_s26, %s3289_s14  ;;  %s3293_s17 = sshll.u32 %s3375_s15, 4  ;;  %s3294_s17 = int_to_ptr.vmem [resolvable:$false] %s3293_s17 }
  0xac   : > { %991 = vmatpush1.bf16.msra.mxu1 %v2933_v18  ;;  %v3030_v18 = vld [vmem:[#allocation5 + $0x104] ss:$24 sps:$4 sm:$0xff]   ;;  %s3295_s18 = scalar_lea.vmem %s3294_s17, 4096  ;;  %p3296_p12 = scmp.lt.s32.totalorder %s4062_s26, %s3294_s17 }
  0xad   : > { %992 = vmatprep.subr.bf16.mxu1 %v2934_v19  ;;  %v3032_v19 = vld [vmem:[#allocation5 + $0x100] ss:$24 sps:$4 sm:$0xff]   ;;  %1130 = vmatprep.subr.bf16.mxu0 %v3030_v18  ;;  %p3291_p3 = pnand %p3290_p10, %p3561_p5  ;;  %p3297_p2 = scmp.lt.s32.totalorder %s3295_s18, %s3289_s14 }
  0xae   : > { %1131 = vmatpush1.bf16.msra.mxu0 %v3032_v19 }
  0xaf   : > { %p3292_p7 = pneg %p3291_p3  ;;  %p3298_p1 = por %p3297_p2, %p3296_p12 }
  0xb0   : > { %993 = vmatpush1.bf16.msra.mxu1 %v2936_v20  ;;  %v3033_v20 = vld [vmem:[#allocation5 + $0x134] ss:$24 sps:$4 sm:$0xff]  }
  0xb1   : > { %994 = vmatprep.subr.bf16.mxu1 %v2937_v21  ;;  %v3035_v21 = vld [vmem:[#allocation5 + $0x130] ss:$24 sps:$4 sm:$0xff]   ;;  %1132 = vmatprep.subr.bf16.mxu0 %v3033_v20  ;;  %p3299_p4 = pnand %p3298_p1, %p3292_p7 }
  0xb2   : > { %1133 = vmatpush1.bf16.msra.mxu0 %v3035_v21 }
  0xb4   : > { %995 = vmatpush1.bf16.msra.mxu1 %v2939_v22  ;;  %v3036_v22 = vld [vmem:[#allocation5 + $0x164] ss:$24 sps:$4 sm:$0xff]  }
  0xb5   : > { %996 = vmatprep.subr.bf16.mxu1 %v2940_v23  ;;  %v3038_v23 = vld [vmem:[#allocation5 + $0x160] ss:$24 sps:$4 sm:$0xff]   ;;  %1134 = vmatprep.subr.bf16.mxu0 %v3036_v22 }
  0xb6   : > { %1135 = vmatpush1.bf16.msra.mxu0 %v3038_v23 }
  0xb8   : > { %997 = vmatpush1.bf16.msra.mxu1 %v2942_v24  ;;  %v3039_v24 = vld [vmem:[#allocation5 + $0x194] ss:$24 sps:$4 sm:$0xff]  }
  0xb9   : > { %998 = vmatprep.subr.bf16.mxu1 %v2943_v25  ;;  %v3041_v25 = vld [vmem:[#allocation5 + $0x190] ss:$24 sps:$4 sm:$0xff]   ;;  %1136 = vmatprep.subr.bf16.mxu0 %v3039_v24 }
  0xba   : > { %1137 = vmatpush1.bf16.msra.mxu0 %v3041_v25 }
  0xbc   : > { %999 = vmatpush1.bf16.msra.mxu1 %v2945_v26  ;;  %v3042_v26 = vld [vmem:[#allocation5 + $0x1c4] ss:$24 sps:$4 sm:$0xff]  }
  0xbd   : > { %1000 = vmatprep.subr.bf16.mxu1 %v2946_v27  ;;  %v3044_v27 = vld [vmem:[#allocation5 + $0x1c0] ss:$24 sps:$4 sm:$0xff]   ;;  %1138 = vmatprep.subr.bf16.mxu0 %v3042_v26 }
  0xbe   : > { %1139 = vmatpush1.bf16.msra.mxu0 %v3044_v27 }
  0xbf   : > { %1140 = vmatprep.subr.bf16.mxu0 %v3045_v28 }
  0xc0   : > { %1001 = vmatpush1.bf16.msra.mxu1 %v2948_v30  ;;  %v3048_v30 = vld [vmem:[#allocation5 + $0x224] ss:$24 sps:$4 sm:$0xff]  }
  0xc1   : > { %1002 = vmatprep.subr.bf16.mxu1 %v2949_v32  ;;  %v3051_v32 = vld [vmem:[#allocation5 + $0x254] ss:$24 sps:$4 sm:$0xff]  }
  0xc2   : > { %1141 = vmatpush1.bf16.msra.mxu0 %v3047_v29 }
  0xc3   : > { %1142 = vmatprep.subr.bf16.mxu0 %v3048_v30 }
  0xc4   : > { %1003 = vmatpush1.bf16.msra.mxu1 %v2951_v35  ;;  %v3056_v35 = vld [vmem:[#allocation5 + $0x280] ss:$24 sps:$4 sm:$0xff]  }
  0xc5   : > { %1004 = vmatprep.subr.bf16.mxu1 %v2952_v36  ;;  %v3057_v36 = vld [vmem:[#allocation5 + $0x2b4] ss:$24 sps:$4 sm:$0xff]  }
  0xc6   : > { %1143 = vmatpush1.bf16.msra.mxu0 %v3050_v31 }
  0xc7   : > { %1144 = vmatprep.subr.bf16.mxu0 %v3051_v32 }
  0xc8   : > { %1005 = vmatpush1.bf16.msra.mxu1 %v2954_v39  ;;  %v3062_v39 = vld [vmem:[#allocation5 + $0x2e0] ss:$24 sps:$4 sm:$0xff]  }
  0xc9   : > { %1047 = vmatprep.subr.bf16.mxu1 %v2960_v41  ;;  %v424_v41 = vlaneseq }
  0xca   : > { %1145 = vmatpush1.bf16.msra.mxu0 %v3053_v33 }
  0xcb   : > { %1007 = vmatmul.mubr.bf16.vlgmr.msra.gmra.mrb[0].mxu1 %v3636_v43  ;;  %1146 = vmatprep.subr.bf16.mxu0 %v3054_v34  ;;  %v3684_v42 = vshrl.u32 %v424_v41, 7 }
  0xcc   : > { %1048 = vmatpush1.bf16.msra.mxu1 %v2958_v44  ;;  %1016 = vmatprep.mubr.bf16.mxu1 %v3639_v45  ;;  %v3690_v44 = vld [vmem:[%s4111_s2] sm:$0x3f] }
  0xcd   : > { %1049 = vmatprep.subr.bf16.mxu1 %v2963_v46  ;;  %v434_v24 = vsub.s32 2, %v3684_v42  ;;  %v438_v25 = vsub.s32 3, %v3684_v42 }
  0xce   : > { %1147 = vmatpush1.bf16.msra.mxu0 %v3056_v35 }
  0xcf   : > { %1148 = vmatprep.subr.bf16.mxu0 %v3057_v36  ;;  %v435_v26 = vrot.slane %v3690_v44, %v434_v24  ;;  %v439_v28 = vrot.slane %v3690_v44, %v438_v25 }
  0xd0   : > { %1050 = vmatpush1.bf16.msra.mxu1 %v2961_v48 }
  0xd1   : > { %1051 = vmatprep.subr.bf16.mxu1 %v2966_v49 }
  0xd2   : > { %1149 = vmatpush1.bf16.msra.mxu0 %v3059_v37 }
  0xd3   : > { %1017 = vmatmul.mubr.bf16.gmra.mrb[4].mxu1 %v3644_v50  ;;  %1150 = vmatprep.subr.bf16.mxu0 %v3060_v38 }
  0xd4   : > { %1052 = vmatpush1.bf16.msra.mxu1 %v2964_v51  ;;  %1026 = vmatprep.mubr.bf16.mxu1 %v3647_v52 }
  0xd5   : > { %1053 = vmatprep.subr.bf16.mxu1 %v2969_v53 }
  0xd6   : > { %1151 = vmatpush1.bf16.msra.mxu0 %v3062_v39 }
  0xd7   : > { %2726 = vmatprep.subr.bf16.mxu0 %v3373_v40 }
  0xd8   : > { %1054 = vmatpush1.bf16.msra.mxu1 %v2967_v54 }
  0xd9   : > { %1055 = vmatprep.subr.bf16.mxu1 %v2972_v55  ;;  %1153 = vmatmul.mubr.bf16.vlgmr.msra.gmra.mrb[0].mxu0 %v3636_v43 }
  0xda   : > { %1162 = vmatprep.mubr.bf16.mxu0 %v3639_v45 }
  0xdb   : > { %1027 = vmatmul.mubr.bf16.gmra.mrb[8].mxu1 %v3652_v56 }
  0xdc   : > { %1056 = vmatpush1.bf16.msra.mxu1 %v2970_v57  ;;  %1036 = vmatprep.mubr.bf16.mxu1 %v3655_v58 }
  0xdd   : > { %1057 = vmatprep.subr.bf16.mxu1 %v2975_v59 }
  0xe0   : > { %1058 = vmatpush1.bf16.msra.mxu1 %v2973_v60 }
  0xe1   : > { %1059 = vmatprep.subr.bf16.mxu1 %v2978_v61  ;;  %1163 = vmatmul.mubr.bf16.gmra.mrb[4].mxu0 %v3644_v50 }
  0xe2   : > { %1172 = vmatprep.mubr.bf16.mxu0 %v3647_v52 }
  0xe3   : > { %1037 = vmatmul.mubr.bf16.gmra.mrb[12].mxu1 %v3660_v62 }
  0xe4   : > { %1060 = vmatpush1.bf16.msra.mxu1 %v2976_v63  ;;  %1079 = vmatprep.mubr.bf16.mxu1 %v3631_v13  ;;  %v3005_v13 = vld [vmem:[#allocation5 + $0x278] ss:$24 sps:$4 sm:$0xff]  }
  0xe5   : > { %1061 = vmatprep.subr.bf16.mxu1 %v2981_v0 }
  0xe8   : > { %1062 = vmatpush1.bf16.msra.mxu1 %v2979_v1 }
  0xe9   : > { %1063 = vmatprep.subr.bf16.mxu1 %v2984_v2  ;;  %1173 = vmatmul.mubr.bf16.gmra.mrb[8].mxu0 %v3652_v56 }
  0xea   : > { %1182 = vmatprep.mubr.bf16.mxu0 %v3655_v58 }
  0xec   : > { %1064 = vmatpush1.bf16.msra.mxu1 %v2982_v3 }
  0xed   : > { %1065 = vmatprep.subr.bf16.mxu1 %v2989_v4 }
  0xf0   : > { %1066 = vmatpush1.bf16.msra.mxu1 %v2987_v5 }
  0xf1   : > { %1067 = vmatprep.subr.bf16.mxu1 %v2993_v6  ;;  %1183 = vmatmul.mubr.bf16.gmra.mrb[12].mxu0 %v3660_v62 }
  0xf2   : > { %2728 = vmatprep.mubr.msk.bf16.mxu0 %vm3374_vm0, %v3373_v40 }
  0xf4   : > { %1068 = vmatpush1.bf16.msra.mxu1 %v2991_v7 }
  0xf5   : > { %1069 = vmatprep.subr.bf16.mxu1 %v2998_v8 }
  0xf8   : > { %1070 = vmatpush1.bf16.msra.mxu1 %v2996_v9 }
  0xf9   : > { %1071 = vmatprep.subr.bf16.mxu1 %v3002_v10 }
  0xfc   : > { %1072 = vmatpush1.bf16.msra.mxu1 %v3000_v11 }
  0xfd   : > { %1073 = vmatprep.subr.bf16.mxu1 %v3007_v12 }
 0x100   : > { %1074 = vmatpush1.bf16.msra.mxu1 %v3005_v13 }
 0x101   : > { %1075 = vmatprep.subr.bf16.mxu1 %v3011_v14 }
 0x104   : > { %1076 = vmatpush1.bf16.msra.mxu1 %v3009_v15 }
 0x105   : > { %1077 = vmatprep.subr.bf16.mxu1 %v3014_v16 }
 0x108   : > { %1078 = vmatpush1.bf16.msra.mxu1 %v3012_v17 }
 0x109   : > { %2738 = vmatprep.subr.bf16.mxu1 %v3373_v40 }
 0x10b   : > { %1080 = vmatmul.mubr.bf16.vlgmr.msra.gmra.mrb[16].mxu1 %v3636_v43  ;;  %v4120_v43 = vsub.s32 0, %v3684_v42 }
 0x10c   : > { %1089 = vmatprep.mubr.bf16.mxu1 %v3639_v45  ;;  %v4119_v45 = vsub.s32 1, %v3684_v42 }
 0x10d   : > { %v427_v46 = vrot.slane %v3690_v44, %v4120_v43 }
 0x10e   : > { %v431_v48 = vrot.slane %v3690_v44, %v4119_v45 }
 0x113   : > { %1090 = vmatmul.mubr.bf16.gmra.mrb[20].mxu1 %v3644_v50 }
 0x114   : > { %1099 = vmatprep.mubr.bf16.mxu1 %v3647_v52 }
 0x11b   : > { %1100 = vmatmul.mubr.bf16.gmra.mrb[24].mxu1 %v3652_v56 }
 0x11c   : > { %1109 = vmatprep.mubr.bf16.mxu1 %v3655_v58 }
 0x123   : > { %1110 = vmatmul.mubr.bf16.gmra.mrb[28].mxu1 %v3660_v62 }
 0x124   : > { %2740 = vmatprep.mubr.msk.bf16.mxu1 %vm3374_vm0, %v3373_v40 }
 0x19e   : > { %v1008_v47 = vpop.f32.mrb[0].mxu1 }
 0x19f   : > { %v3699_v49 = vadd.f32 %v1008_v47, %v427_v46  ;;  %v1010_v50 = vpop.f32.mrb[1].mxu1 }
 0x1a0   : > { %v1012_v51 = vpop.f32.mrb[2].mxu1  ;;  %v3701_v54 = vadd.f32 %v1010_v50, %v431_v48 }
 0x1a1   : > { %v1013_v52 = vadd.f32 %v1012_v51, %v427_v46  ;;  %v1014_v53 = vpop.f32.mrb[3].mxu1 }
 0x1a2   : > { %v3703_v55 = vadd.f32 %v1014_v53, %v431_v48 }
 0x1a3   : > { %v1193_v56 = vpack.c.bf16 %v1013_v52, %v3699_v49 }
 0x1a4   : > { %v1194_v57 = vpack.c.bf16 %v3703_v55, %v3701_v54  ;;  %v442_v54 = vsub.s32 4, %v3684_v42  ;;  %v446_v55 = vsub.s32 5, %v3684_v42 }
 0x1a6   : > { %v1018_v58 = vpop.f32.mrb[4].mxu1 }
 0x1a7   : > { %v3708_v59 = vadd.f32 %v1018_v58, %v427_v46  ;;  %v1020_v60 = vpop.f32.mrb[5].mxu1 }
 0x1a8   : > { %v3710_v61 = vadd.f32 %v1020_v60, %v431_v48  ;;  %v1022_v62 = vpop.f32.mrb[6].mxu1 }
 0x1a9   : > { %v3712_v63 = vadd.f32 %v1022_v62, %v427_v46  ;;  %v1024_v0 = vpop.f32.mrb[7].mxu1 }
 0x1aa   : > { %v3714_v1 = vadd.f32 %v1024_v0, %v431_v48 }
 0x1ab   : > { %v1199_v2 = vpack.c.bf16 %v3712_v63, %v3708_v59 }
 0x1ac   : > { %v1200_v3 = vpack.c.bf16 %v3714_v1, %v3710_v61 }
 0x1ae   : > { %v1028_v4 = vpop.f32.mrb[8].mxu1 }
 0x1af   : > { %v3720_v5 = vadd.f32 %v1028_v4, %v427_v46  ;;  %v1030_v6 = vpop.f32.mrb[9].mxu1 }
 0x1b0   : > { %v3722_v7 = vadd.f32 %v1030_v6, %v431_v48  ;;  %v1032_v8 = vpop.f32.mrb[10].mxu1 }
 0x1b1   : > { %v3724_v9 = vadd.f32 %v1032_v8, %v427_v46  ;;  %v1034_v10 = vpop.f32.mrb[11].mxu1 }
 0x1b2   : > { %v3726_v11 = vadd.f32 %v1034_v10, %v431_v48 }
 0x1b3   : > { %v1205_v12 = vpack.c.bf16 %v3724_v9, %v3720_v5  ;;  %v447_v5 = vrot.slane %v3690_v44, %v446_v55  ;;  %v1154_v9 = vpop.f32.mrb[0].mxu0 }
 0x1b4   : > { %v1206_v13 = vpack.c.bf16 %v3726_v11, %v3722_v7 }
 0x1b6   : > { %v1038_v14 = vpop.f32.mrb[12].mxu1 }
 0x1b7   : > { %v3732_v15 = vadd.f32 %v1038_v14, %v427_v46  ;;  %v1040_v16 = vpop.f32.mrb[13].mxu1 }
 0x1b8   : > { %v3734_v17 = vadd.f32 %v1040_v16, %v431_v48  ;;  %v1042_v18 = vpop.f32.mrb[14].mxu1 }
 0x1b9   : > { %v3736_v19 = vadd.f32 %v1042_v18, %v427_v46  ;;  %v1044_v20 = vpop.f32.mrb[15].mxu1 }
 0x1ba   : > { %v3738_v21 = vadd.f32 %v1044_v20, %v431_v48 }
 0x1bb   : > { %v1211_v22 = vpack.c.bf16 %v3736_v19, %v3732_v15  ;;  %v1156_v15 = vpop.f32.mrb[1].mxu0 }
 0x1bc   : > { %v1212_v23 = vpack.c.bf16 %v3738_v21, %v3734_v17  ;;  %v1157_v19 = vadd.f32 %v1156_v15, %v447_v5  ;;  %v1158_v7 = vpop.f32.mrb[2].mxu0 }
 0x1de   : > { %v1081_v27 = vpop.f32.mrb[16].mxu1 }
 0x1df   : > { %v1083_v29 = vpop.f32.mrb[17].mxu1  ;;  %v1082_v31 = vadd.f32 %v1081_v27, %v435_v26 }
 0x1e0   : > { %v1085_v30 = vpop.f32.mrb[18].mxu1  ;;  %v1084_v34 = vadd.f32 %v1083_v29, %v439_v28 }
 0x1e1   : > { %v1086_v32 = vadd.f32 %v1085_v30, %v435_v26  ;;  %v1087_v33 = vpop.f32.mrb[19].mxu1 }
 0x1e2   : > { %v1088_v35 = vadd.f32 %v1087_v33, %v439_v28 }
 0x1e3   : > { %v1195_v36 = vpack.c.bf16 %v1086_v32, %v1082_v31 }
 0x1e4   : > { %v1196_v37 = vpack.c.bf16 %v1088_v35, %v1084_v34 }
 0x1e5   : > { %2727 = vmatpush3.bf16.xpose.msra.mxu0 %v1195_v36 }
 0x1e6   : > { %v1091_v38 = vpop.f32.mrb[20].mxu1  ;;  %2732 = vmatprep.subr.bf16.mxu0 %v3373_v40 }
 0x1e7   : > { %v1093_v39 = vpop.f32.mrb[21].mxu1  ;;  %v1092_v47 = vadd.f32 %v1091_v38, %v435_v26 }
 0x1e8   : > { %v3749_v41 = vadd.f32 %v1093_v39, %v439_v28  ;;  %v1095_v46 = vpop.f32.mrb[22].mxu1 }
 0x1e9   : > { %v1096_v48 = vadd.f32 %v1095_v46, %v435_v26  ;;  %v1097_v49 = vpop.f32.mrb[23].mxu1 }
 0x1ea   : > { %v3751_v50 = vadd.f32 %v1097_v49, %v439_v28 }
 0x1eb   : > { %v1201_v51 = vpack.c.bf16 %v1096_v48, %v1092_v47 }
 0x1ec   : > { %v1202_v52 = vpack.c.bf16 %v3751_v50, %v3749_v41  ;;  %2729 = vmatmul.mubr.bf16.vlgmr.msra.gmra.mrb[16].mxu0 %v1193_v56 }
 0x1ed   : > { %2733 = vmatpush3.bf16.xpose.msra.mxu0 %v1201_v51  ;;  %2734 = vmatprep.mubr.msk.bf16.mxu0 %vm3374_vm0, %v3373_v40 }
 0x1ee   : > { %v1101_v53 = vpop.f32.mrb[24].mxu1  ;;  %2774 = vmatprep.subr.bf16.mxu0 %v3373_v40 }
 0x1ef   : > { %v1102_v58 = vadd.f32 %v1101_v53, %v435_v26  ;;  %v1103_v59 = vpop.f32.mrb[25].mxu1 }
 0x1f0   : > { %v1104_v60 = vadd.f32 %v1103_v59, %v439_v28  ;;  %v1105_v62 = vpop.f32.mrb[26].mxu1 }
 0x1f1   : > { %v1106_v63 = vadd.f32 %v1105_v62, %v435_v26  ;;  %v1107_v0 = vpop.f32.mrb[27].mxu1 }
 0x1f2   : > { %v1108_v4 = vadd.f32 %v1107_v0, %v439_v28 }
 0x1f3   : > { %v1207_v6 = vpack.c.bf16 %v1106_v63, %v1102_v58 }
 0x1f4   : > { %v1208_v8 = vpack.c.bf16 %v1108_v4, %v1104_v60  ;;  %2735 = vmatmul.mubr.bf16.vlgmr.msra.gmra.mrb[20].mxu0 %v1199_v2 }
 0x1f5   : > { %2739 = vmatpush3.bf16.xpose.msra.mxu1 %v1207_v6  ;;  %2775 = vmatpush3.bf16.xpose.msra.mxu0 %v1196_v37 }
 0x1f6   : > { %v1111_v56 = vpop.f32.mrb[28].mxu1  ;;  %2776 = vmatprep.mubr.msk.bf16.mxu0 %vm3374_vm0, %v3373_v40  ;;  %2744 = vmatprep.subr.bf16.mxu1 %v3373_v40 }
 0x1f7   : > { %v1112_v10 = vadd.f32 %v1111_v56, %v435_v26  ;;  %v1113_v14 = vpop.f32.mrb[29].mxu1  ;;  %2786 = vmatprep.subr.bf16.mxu0 %v3373_v40 }
 0x1f8   : > { %v3762_v16 = vadd.f32 %v1113_v14, %v439_v28  ;;  %v1115_v18 = vpop.f32.mrb[30].mxu1 }
 0x1f9   : > { %v1116_v20 = vadd.f32 %v1115_v18, %v435_v26  ;;  %v1117_v24 = vpop.f32.mrb[31].mxu1  ;;  %v1217_v18 = vld [vmem:[#allocation8] sm:$0xff] }
 0x1fa   : > { %v3764_v25 = vadd.f32 %v1117_v24, %v439_v28  ;;  %v1218_v24 = vld [vmem:[#allocation8 + $0x8] sm:$0xff] }
 0x1fb   : > { %v1213_v2 = vpack.c.bf16 %v1116_v20, %v1112_v10 }
 0x1fc   : > { %2741 = vmatmul.mubr.bf16.vlgmr.msra.gmra.mrb[32].mxu1 %v1205_v12  ;;  %2777 = vmatmul.mubr.bf16.vlgmr.msra.gmra.mrb[24].mxu0 %v1194_v57  ;;  %v1214_v27 = vpack.c.bf16 %v3764_v25, %v3762_v16  ;;  %v443_v57 = vrot.slane %v3690_v44, %v442_v54 }
 0x1fd   : > { %2745 = vmatpush3.bf16.xpose.msra.mxu1 %v1213_v2  ;;  %2787 = vmatpush3.bf16.xpose.msra.mxu0 %v1208_v8 }
 0x1fe   : > { %2746 = vmatprep.mubr.msk.bf16.mxu1 %vm3374_vm0, %v3373_v40  ;;  %2788 = vmatprep.mubr.msk.bf16.mxu0 %vm3374_vm0, %v3373_v40  ;;  %v1155_v12 = vadd.f32 %v1154_v9, %v443_v57  ;;  %v1159_v11 = vadd.f32 %v1158_v7, %v443_v57  ;;  %v3842_v7 = vld [vmem:[#allocation8 + $0x18] sm:$0xff] }
 0x1ff   : > { %2750 = vmatprep.subr.bf16.mxu1 %v3373_v40  ;;  %2798 = vmatprep.subr.bf16.mxu0 %v3373_v40 }
 0x200   : > { %v1197_v26 = vpack.c.bf16 %v1159_v11, %v1155_v12  ;;  %v3838_v12 = vld [vmem:[#allocation8 + $0x10] sm:$0xff] }
 0x204   : > { %2747 = vmatmul.mubr.bf16.vlgmr.msra.gmra.mrb[36].mxu1 %v1211_v22  ;;  %2789 = vmatmul.mubr.bf16.vlgmr.msra.gmra.mrb[28].mxu0 %v1206_v13  ;;  %v1160_v13 = vpop.f32.mrb[3].mxu0 }
 0x205   : > { %2752 = vmatprep.mubr.msk.bf16.mxu1 %vm3374_vm0, %v3373_v40  ;;  %2800 = vmatprep.mubr.msk.bf16.mxu0 %vm3374_vm0, %v3373_v40  ;;  %v1161_v22 = vadd.f32 %v1160_v13, %v447_v5  ;;  %v1164_v29 = vpop.f32.mrb[4].mxu0 }
 0x206   : > { %2751 = vmatpush3.bf16.msra.mxu1 %v1197_v26  ;;  %v3795_v30 = vadd.f32 %v1164_v29, %v443_v57  ;;  %v1166_v31 = vpop.f32.mrb[5].mxu0 }
 0x207   : > { %v1198_v28 = vpack.c.bf16 %v1161_v22, %v1157_v19  ;;  %2756 = vmatprep.subr.bf16.mxu1 %v3373_v40  ;;  %v3798_v44 = vadd.f32 %v1166_v31, %v447_v5  ;;  %v1168_v32 = vpop.f32.mrb[6].mxu0  ;;  %v1221_v31 = vld [vmem:[#allocation8 + $0x20] sm:$0xff] }
 0x208   : > { %v3800_v33 = vadd.f32 %v1168_v32, %v443_v57  ;;  %v1170_v34 = vpop.f32.mrb[7].mxu0 }
 0x209   : > { %2799 = vmatpush3.bf16.msra.mxu0 %v1198_v28  ;;  %v3802_v35 = vadd.f32 %v1170_v34, %v447_v5  ;;  %v1174_v38 = vpop.f32.mrb[8].mxu0 }
 0x20a   : > { %2810 = vmatprep.subr.bf16.mxu0 %v3373_v40  ;;  %v1203_v36 = vpack.c.bf16 %v3800_v33, %v3795_v30  ;;  %v3808_v39 = vadd.f32 %v1174_v38, %v443_v57  ;;  %v1176_v46 = vpop.f32.mrb[9].mxu0 }
 0x20b   : > { %v1204_v37 = vpack.c.bf16 %v3802_v35, %v3798_v44  ;;  %v3810_v47 = vadd.f32 %v1176_v46, %v447_v5  ;;  %v1178_v48 = vpop.f32.mrb[10].mxu0  ;;  %v1222_v46 = vld [vmem:[#allocation8 + $0x28] sm:$0xff] }
 0x20c   : > { %v3812_v49 = vadd.f32 %v1178_v48, %v443_v57  ;;  %v1180_v51 = vpop.f32.mrb[11].mxu0 }
 0x20d   : > { %v3814_v53 = vadd.f32 %v1180_v51, %v447_v5  ;;  %v1184_v60 = vpop.f32.mrb[12].mxu0 }
 0x20e   : > { %v1209_v58 = vpack.c.bf16 %v3812_v49, %v3808_v39  ;;  %v3820_v62 = vadd.f32 %v1184_v60, %v443_v57  ;;  %v1186_v63 = vpop.f32.mrb[13].mxu0 }
 0x20f   : > { %v1210_v59 = vpack.c.bf16 %v3814_v53, %v3810_v47  ;;  %v3822_v0 = vadd.f32 %v1186_v63, %v447_v5  ;;  %v1188_v4 = vpop.f32.mrb[14].mxu0 }
 0x210   : > { %v3824_v6 = vadd.f32 %v1188_v4, %v443_v57  ;;  %v1190_v8 = vpop.f32.mrb[15].mxu0 }
 0x211   : > { %v3826_v56 = vadd.f32 %v1190_v8, %v447_v5 }
 0x212   : > { %v1215_v10 = vpack.c.bf16 %v3824_v6, %v3820_v62 }
 0x213   : > { %v1216_v14 = vpack.c.bf16 %v3826_v56, %v3822_v0  ;;  %v3066_v0 = vld [vmem:[#allocation7 + $0x10] ss:$8 sps:$4 sm:$0xff]  }
 0x2bf   : > { %v1259_v20 = vpop.f32.mrb[16].mxu0 }
 0x2c0   : > { %v3832_v2 = vadd.f32 %v1259_v20, %v1217_v18  ;;  %v2730_v54 = vpop.f32.mrb[17].mxu0 }
 0x2c1   : > { %v1262_v55 = vpop.f32.mrb[18].mxu0 }
 0x2c2   : > { %v3834_v9 = vadd.f32 %v1262_v55, %v1218_v24  ;;  %v2731_v57 = vpop.f32.mrb[19].mxu0  ;;  %v1398_v5 = vsel %vm1397_vm1, %v3832_v2, -inf }
 0x2c3   : > { %1399 = vmax.xlane.f32.xlu0 %v1398_v5  ;;  %v3850_v5 = vld [vmem:[#allocation8 + $0x30] sm:$0xff] }
 0x2c4   : > { %v1401_v15 = vsel %vm1397_vm1, %v3834_v9, -inf }
 0x2c7   : > { %1402 = vmax.xlane.f32.xlu0 %v1401_v15  ;;  %v1300_v19 = vpop.f32.mrb[20].mxu0 }
 0x2c8   : > { %v1391_v11 = vadd.f32 %v1300_v19, %v3838_v12  ;;  %v2736_v13 = vpop.f32.mrb[21].mxu0 }
 0x2c9   : > { %v1303_v22 = vpop.f32.mrb[22].mxu0  ;;  %v3852_v13 = vld [vmem:[#allocation8 + $0x38] sm:$0xff] }
 0x2ca   : > { %v1392_v26 = vadd.f32 %v1303_v22, %v3842_v7  ;;  %v2737_v28 = vpop.f32.mrb[23].mxu0  ;;  %v1404_v29 = vsel %vm1397_vm1, %v1391_v11, -inf }
 0x2cb   : > { %1405 = vmax.xlane.f32.xlu1 %v1404_v29 }
 0x2cc   : > { %v1407_v32 = vsel %vm1397_vm1, %v1392_v26, -inf }
 0x2cf   : > { %v1341_v34 = vpop.f32.mrb[32].mxu1  ;;  %1408 = vmax.xlane.f32.xlu1 %v1407_v32  ;;  %v1704_v38 = vpop.f32.mrb[24].mxu0 }
 0x2d0   : > { %v1393_v48 = vadd.f32 %v1341_v34, %v1221_v31  ;;  %v2742_v51 = vpop.f32.mrb[33].mxu1  ;;  %v2778_v60 = vpop.f32.mrb[25].mxu0 }
 0x2d1   : > { %v1344_v63 = vpop.f32.mrb[34].mxu1  ;;  %v1707_v4 = vpop.f32.mrb[26].mxu0  ;;  %v1834_v60 = vadd.f32 %v1704_v38, %v1217_v18 }
 0x2d2   : > { %v1394_v8 = vadd.f32 %v1344_v63, %v1222_v46  ;;  %v2743_v20 = vpop.f32.mrb[35].mxu1  ;;  %v2779_v54 = vpop.f32.mrb[27].mxu0  ;;  %v1410_v55 = vsel %vm1397_vm1, %v1393_v48, -inf  ;;  %v1835_v45 = vadd.f32 %v1707_v4, %v1218_v24 }
 0x2d3   : > { %1411 = vmax.xlane.f32.xlu0 %v1410_v55 }
 0x2d4   : > { %v1413_v57 = vsel %vm1397_vm1, %v1394_v8, -inf }
 0x2d5   : > { %1414 = vmax.xlane.f32.xlu1 %v1413_v57 }
 0x2d7   : > { %v1382_v15 = vpop.f32.mrb[36].mxu1  ;;  %v1786_v19 = vpop.f32.mrb[28].mxu0 }
 0x2d8   : > { %v1395_v22 = vadd.f32 %v1382_v15, %v3850_v5  ;;  %v3855_v28 = vadd.f32 %v1786_v19, %v1221_v31  ;;  %v2748_v29 = vpop.f32.mrb[37].mxu1  ;;  %v2790_v32 = vpop.f32.mrb[29].mxu0  ;;  %v1842_v31 = vsel %vm1397_vm1, %v1834_v60, -inf  ;;  %v1845_v15 = vsel %vm1397_vm1, %v1835_v45, -inf }
 0x2d9   : > { %v1385_v34 = vpop.f32.mrb[38].mxu1  ;;  %v1789_v51 = vpop.f32.mrb[30].mxu0 }
 0x2da   : > { %v1396_v63 = vadd.f32 %v1385_v34, %v3852_v13  ;;  %v3858_v20 = vadd.f32 %v1789_v51, %v1222_v46  ;;  %v2749_v54 = vpop.f32.mrb[39].mxu1  ;;  %v2791_v55 = vpop.f32.mrb[31].mxu0  ;;  %v1416_v57 = vsel %vm1397_vm1, %v1395_v22, -inf }
 0x2db   : > { %1417 = vmax.xlane.f32.xlu0 %v1416_v57 }
 0x2dc   : > { %v1419_v43 = vsel %vm1397_vm1, %v1396_v63, -inf }
 0x2dd   : > { %1420 = vmax.xlane.f32.xlu1 %v1419_v43 }
 0x2df   : > { %1843 = vmax.xlane.f32.xlu0 %v1842_v31 }
 0x2e1   : > { %1846 = vmax.xlane.f32.xlu1 %v1845_v15 }
 0x350   : > { %v1400_v18 = vpop.xlane.xlu0 %1399 }
 0x351   : > { %v1422_v38 = vsub.f32 %v3832_v2, %v1400_v18 }
 0x353   : > { %v1430_v46 = vmul.f32 1.442695, %v1422_v38 }
 0x354   : > { %v1403_v19 = vpop.xlane.xlu0 %1402 }
 0x355   : > { %v1423_v29 = vsub.f32 %v3834_v9, %v1403_v19  ;;  %3111 = vpow2.f32 %v1430_v46 }
 0x357   : > { %v1432_v32 = vmul.f32 1.442695, %v1423_v29 }
 0x358   : > { %v1406_v34 = vpop.xlane.xlu1 %1405 }
 0x359   : > { %3113 = vpow2.f32 %v1432_v32  ;;  %v1424_v24 = vsub.f32 %v1391_v11, %v1406_v34 }
 0x35b   : > { %v1434_v4 = vmul.f32 1.442695, %v1424_v24 }
 0x35c   : > { %v1409_v43 = vpop.xlane.xlu1 %1408 }
 0x35d   : > { %v1425_v51 = vsub.f32 %v1392_v26, %v1409_v43  ;;  %3115 = vpow2.f32 %v1434_v4 }
 0x35f   : > { %v1436_v54 = vmul.f32 1.442695, %v1425_v51  ;;  %v3866_v31 = vpop.eup %3111 }
 0x360   : > { %v1412_v55 = vpop.xlane.xlu0 %1411 }
 0x361   : > { %3117 = vpow2.f32 %v1436_v54  ;;  %v1426_v57 = vsub.f32 %v1393_v48, %v1412_v55 }
 0x362   : > { %v1415_v2 = vpop.xlane.xlu1 %1414 }
 0x363   : > { %v3868_v15 = vpop.eup %3113  ;;  %v1427_v18 = vsub.f32 %v1394_v8, %v1415_v2  ;;  %v1438_v38 = vmul.f32 1.442695, %v1426_v57 }
 0x364   : > { %v1470_v9 = vpack.c.bf16 %v3868_v15, %v3866_v31 }
 0x365   : > { %v1440_v46 = vmul.f32 1.442695, %v1427_v18 }
 0x366   : > { %2753 = vmatmul.mubr.msk.bf16.vlgmr.msra.gmra.mrb[40].mxu1 %vm1397_vm1, %v1470_v9 }
 0x367   : > { %3119 = vpow2.f32 %v1440_v46  ;;  %2757 = vmatpush3.bf16.msra.mxu1 %v1203_v36  ;;  %2758 = vmatprep.mubr.msk.bf16.mxu1 %vm3374_vm0, %v3373_v40  ;;  %v3879_v48 = vpop.eup %3115 }
 0x368   : > { %v1418_v11 = vpop.xlane.xlu0 %1417  ;;  %2762 = vmatprep.subr.bf16.mxu1 %v3373_v40  ;;  %3121 = vpow2.f32 %v1438_v38 }
 0x369   : > { %v1428_v26 = vsub.f32 %v1395_v22, %v1418_v11 }
 0x36a   : > { %v1421_v8 = vpop.xlane.xlu1 %1420 }
 0x36b   : > { %v3881_v19 = vpop.eup %3117  ;;  %v1429_v29 = vsub.f32 %v1396_v63, %v1421_v8  ;;  %v1442_v30 = vmul.f32 1.442695, %v1428_v26  ;;  %v1854_v26 = vsel %vm1397_vm1, %v3855_v28, -inf }
 0x36c   : > { %v1844_v32 = vpop.xlane.xlu0 %1843  ;;  %v1471_v34 = vpack.c.bf16 %v3881_v19, %v3879_v48 }
 0x36d   : > { %v1444_v33 = vmul.f32 1.442695, %v1429_v29  ;;  %v1866_v36 = vsub.f32 %v1834_v60, %v1844_v32 }
 0x36e   : > { %2759 = vmatmul.mubr.msk.bf16.vlgmr.msra.gmra.mrb[44].mxu1 %vm1397_vm1, %v1471_v34  ;;  %v1847_v24 = vpop.xlane.xlu1 %1846 }
 0x36f   : > { %3123 = vpow2.f32 %v1444_v33  ;;  %v1874_v4 = vmul.f32 1.442695, %v1866_v36  ;;  %2763 = vmatpush3.bf16.msra.mxu1 %v1209_v58  ;;  %v1867_v22 = vsub.f32 %v1835_v45, %v1847_v24  ;;  %2764 = vmatprep.mubr.msk.bf16.mxu1 %vm3374_vm0, %v3373_v40 }
 0x370   : > { %2768 = vmatprep.subr.bf16.mxu1 %v3373_v40  ;;  %3125 = vpow2.f32 %v1442_v30 }
 0x371   : > { %v3892_v63 = vpop.eup %3119  ;;  %v1876_v43 = vmul.f32 1.442695, %v1867_v22  ;;  %3127 = vpow2.f32 %v1874_v4  ;;  %v1446_v4 = vsel %vm1397_vm1, %v3866_v31, 0.0  ;;  %v3065_v22 = vld [vmem:[#allocation7 + $0x4] ss:$8 sps:$4 sm:$0xff]  }
 0x372   : > { %v3894_v60 = vpop.eup %3121 }
 0x373   : > { %3129 = vpow2.f32 %v1876_v43  ;;  %v1472_v51 = vpack.c.bf16 %v3892_v63, %v3894_v60 }
 0x376   : > { %2765 = vmatmul.mubr.msk.bf16.vlgmr.msra.gmra.mrb[48].mxu1 %vm1397_vm1, %v1472_v51 }
 0x377   : > { %2769 = vmatpush3.bf16.msra.mxu1 %v1215_v10  ;;  %2770 = vmatprep.mubr.msk.bf16.mxu1 %vm3374_vm0, %v3373_v40 }
 0x378   : > { %2780 = vmatprep.subr.bf16.mxu1 %v3373_v40 }
 0x379   : > { %v3905_v45 = vpop.eup %3123 }
 0x37a   : > { %v3907_v39 = vpop.eup %3125 }
 0x37b   : > { %v3909_v49 = vpop.eup %3127  ;;  %v1473_v58 = vpack.c.bf16 %v3905_v45, %v3907_v39 }
 0x37c   : > { %v1890_v24 = vsel %vm1397_vm1, %v3909_v49, 0.0 }
 0x37d   : > { %v3913_v54 = vpop.eup %3129 }
 0x37e   : > { %2771 = vmatmul.mubr.msk.bf16.vlgmr.msra.gmra.mrb[52].mxu1 %vm1397_vm1, %v1473_v58  ;;  %v1914_v62 = vpack.c.bf16 %v3913_v54, %v3909_v49 }
 0x37f   : > { %2782 = vmatprep.mubr.msk.bf16.mxu1 %vm3374_vm0, %v3373_v40 }
 0x380   : > { %2781 = vmatpush3.bf16.xpose.msra.mxu1 %v1202_v52  ;;  %2801 = vmatmul.mubr.msk.bf16.vlgmr.msra.gmra.mrb[32].mxu0 %vm1397_vm1, %v1914_v62 }
 0x381   : > { %2811 = vmatpush3.bf16.msra.mxu0 %v1210_v59  ;;  %2792 = vmatprep.subr.bf16.mxu1 %v3373_v40 }
 0x382   : > { %2812 = vmatprep.mubr.msk.bf16.mxu0 %vm3374_vm0, %v3373_v40  ;;  %2318 = vmatprep.subr.bf16.mxu0 %v3065_v22 }
 0x387   : > { %2783 = vmatmul.mubr.bf16.vlgmr.msra.gmra.mrb[56].mxu1 %v1200_v3 }
 0x388   : > { %2793 = vmatpush3.bf16.xpose.msra.mxu1 %v1214_v27  ;;  %2794 = vmatprep.mubr.msk.bf16.mxu1 %vm3374_vm0, %v3373_v40 }
 0x389   : > { %2804 = vmatprep.subr.bf16.mxu1 %v3373_v40 }
 0x38f   : > { %2795 = vmatmul.mubr.bf16.vlgmr.msra.gmra.mrb[60].mxu1 %v1212_v23 }
 0x390   : > { %2805 = vmatpush3.bf16.msra.mxu1 %v1204_v37  ;;  %2806 = vmatprep.mubr.msk.bf16.mxu1 %vm3374_vm0, %v3373_v40 }
 0x391   : > { %2816 = vmatprep.subr.bf16.mxu1 %v3373_v40 }
 0x439   : > { %v3948_v61 = vpop.f32.mrb[40].mxu1 }
 0x43a   : > { %v2754_v1 = vpop.f32.mrb[41].mxu1 }
 0x43b   : > { %v3950_v3 = vpop.f32.mrb[42].mxu1 }
 0x43c   : > { %v2755_v41 = vpop.f32.mrb[43].mxu1 }
 0x441   : > { %v3952_v50 = vpop.f32.mrb[44].mxu1 }
 0x442   : > { %v2760_v52 = vpop.f32.mrb[45].mxu1 }
 0x443   : > { %v3954_v17 = vpop.f32.mrb[46].mxu1 }
 0x444   : > { %v2761_v21 = vpop.f32.mrb[47].mxu1 }
 0x449   : > { %v3956_v23 = vpop.f32.mrb[48].mxu1 }
 0x44a   : > { %v2766_v16 = vpop.f32.mrb[49].mxu1 }
 0x44b   : > { %v3958_v25 = vpop.f32.mrb[50].mxu1 }
 0x44c   : > { %v2767_v27 = vpop.f32.mrb[51].mxu1 }
 0x451   : > { %v3960_v44 = vpop.f32.mrb[52].mxu1 }
 0x452   : > { %v2772_v35 = vpop.f32.mrb[53].mxu1 }
 0x453   : > { %v3962_v37 = vpop.f32.mrb[54].mxu1  ;;  %v3964_v47 = vpop.f32.mrb[32].mxu0 }
 0x454   : > { %v2773_v53 = vpop.f32.mrb[55].mxu1  ;;  %v2802_v59 = vpop.f32.mrb[33].mxu0 }
 0x455   : > { %v3966_v6 = vpop.f32.mrb[34].mxu0 }
 0x456   : > { %v2803_v10 = vpop.f32.mrb[35].mxu0 }
 0x45a   : > { %v1745_v55 = vpop.f32.mrb[56].mxu1 }
 0x45b   : > { %v1836_v57 = vadd.f32 %v1745_v55, %v3838_v12  ;;  %v2784_v2 = vpop.f32.mrb[57].mxu1  ;;  %v1857_v12 = vsel %vm1397_vm1, %v3858_v20, -inf }
 0x45c   : > { %v1748_v18 = vpop.f32.mrb[58].mxu1 }
 0x45d   : > { %v1837_v9 = vadd.f32 %v1748_v18, %v3842_v7  ;;  %v2785_v38 = vpop.f32.mrb[59].mxu1  ;;  %v1848_v46 = vsel %vm1397_vm1, %v1836_v57, -inf }
 0x45e   : > { %1849 = vmax.xlane.f32.xlu0 %v1848_v46 }
 0x45f   : > { %v1851_v11 = vsel %vm1397_vm1, %v1837_v9, -inf }
 0x460   : > { %1852 = vmax.xlane.f32.xlu1 %v1851_v11 }
 0x462   : > { %v1827_v8 = vpop.f32.mrb[60].mxu1  ;;  %1855 = vmax.xlane.f32.xlu0 %v1854_v26  ;;  %v1452_v26 = vsel %vm1397_vm1, %v3879_v48, 0.0 }
 0x463   : > { %v1840_v29 = vadd.f32 %v1827_v8, %v3850_v5  ;;  %v2796_v32 = vpop.f32.mrb[61].mxu1  ;;  %v1893_v5 = vsel %vm1397_vm1, %v3913_v54, 0.0 }
 0x464   : > { %v1830_v34 = vpop.f32.mrb[62].mxu1  ;;  %1858 = vmax.xlane.f32.xlu1 %v1857_v12  ;;  %v1455_v32 = vsel %vm1397_vm1, %v3881_v19, 0.0 }
 0x465   : > { %v1841_v7 = vadd.f32 %v1830_v34, %v3852_v13  ;;  %v2797_v30 = vpop.f32.mrb[63].mxu1  ;;  %v1860_v33 = vsel %vm1397_vm1, %v1840_v29, -inf  ;;  %v1449_v13 = vsel %vm1397_vm1, %v3868_v15, 0.0  ;;  %v3068_v34 = vld [vmem:[#allocation7 + $0x14] ss:$8 sps:$4 sm:$0xff]  }
 0x466   : > { %1861 = vmax.xlane.f32.xlu0 %v1860_v33 }
 0x467   : > { %v1863_v36 = vsel %vm1397_vm1, %v1841_v7, -inf }
 0x468   : > { %1864 = vmax.xlane.f32.xlu1 %v1863_v36  ;;  %v3071_v36 = vld [vmem:[#allocation7 + $0x24] ss:$8 sps:$4 sm:$0xff]  }
 0x46a   : > { %1891 = vadd.xlane.f32.xlu0 %v1890_v24 }
 0x46c   : > { %1894 = vadd.xlane.f32.xlu1 %v1893_v5 }
 0x46e   : > { %1447 = vadd.xlane.f32.xlu0 %v1446_v4  ;;  %v1458_v4 = vsel %vm1397_vm1, %v3894_v60, 0.0 }
 0x470   : > { %1450 = vadd.xlane.f32.xlu1 %v1449_v13 }
 0x4eb   : > { %v1850_v43 = vpop.xlane.xlu0 %1849 }
 0x4ec   : > { %v1868_v51 = vsub.f32 %v1836_v57, %v1850_v43  ;;  %v3069_v43 = vld [vmem:[#allocation7 + $0x20] ss:$8 sps:$4 sm:$0xff]  }
 0x4ed   : > { %v1853_v58 = vpop.xlane.xlu1 %1852 }
 0x4ee   : > { %v1878_v62 = vmul.f32 1.442695, %v1868_v51  ;;  %v1869_v49 = vsub.f32 %v1837_v9, %v1853_v58  ;;  %v1461_v51 = vsel %vm1397_vm1, %v3892_v63, 0.0  ;;  %v3074_v58 = vld [vmem:[#allocation7 + $0x34] ss:$8 sps:$4 sm:$0xff]  }
 0x4ef   : > { %v1856_v1 = vpop.xlane.xlu0 %1855 }
 0x4f0   : > { %3131 = vpow2.f32 %v1878_v62  ;;  %v1880_v41 = vmul.f32 1.442695, %v1869_v49  ;;  %v1870_v54 = vsub.f32 %v3855_v28, %v1856_v1  ;;  %v3072_v49 = vld [vmem:[#allocation7 + $0x30] ss:$8 sps:$4 sm:$0xff]   ;;  %v3077_v1 = vld [vmem:[#allocation7 + $0x44] ss:$8 sps:$4 sm:$0xff]  }
 0x4f1   : > { %v1859_v52 = vpop.xlane.xlu1 %1858 }
 0x4f2   : > { %3133 = vpow2.f32 %v1880_v41  ;;  %v1882_v31 = vmul.f32 1.442695, %v1870_v54  ;;  %v1871_v21 = vsub.f32 %v3858_v20, %v1859_v52  ;;  %v1467_v41 = vsel %vm1397_vm1, %v3905_v45, 0.0  ;;  %v3080_v54 = vld [vmem:[#allocation7 + $0x54] ss:$8 sps:$4 sm:$0xff]  }
 0x4f3   : > { %v1862_v16 = vpop.xlane.xlu0 %1861  ;;  %v3078_v52 = vld [vmem:[#allocation7 + $0x50] ss:$8 sps:$4 sm:$0xff]  }
 0x4f4   : > { %v1884_v15 = vmul.f32 1.442695, %v1871_v21  ;;  %v1872_v27 = vsub.f32 %v1840_v29, %v1862_v16  ;;  %3135 = vpow2.f32 %v1882_v31  ;;  %v3063_v29 = vld [vmem:[#allocation7] ss:$8 sps:$4 sm:$0xff]   ;;  %v3083_v31 = vld [vmem:[#allocation7 + $0x64] ss:$8 sps:$4 sm:$0xff]  }
 0x4f5   : > { %v1865_v35 = vpop.xlane.xlu1 %1864  ;;  %v3081_v21 = vld [vmem:[#allocation7 + $0x60] ss:$8 sps:$4 sm:$0xff]   ;;  %v3086_v16 = vld [vmem:[#allocation7 + $0x74] ss:$8 sps:$4 sm:$0xff]   ;;  %v3090_v45 = vld [vmem:[#allocation7 + $0x90] ss:$8 sps:$4 sm:$0xff]  }
 0x4f6   : > { %3137 = vpow2.f32 %v1884_v15  ;;  %v1886_v53 = vmul.f32 1.442695, %v1872_v27  ;;  %v1873_v59 = vsub.f32 %v1841_v7, %v1865_v35  ;;  %v3084_v15 = vld [vmem:[#allocation7 + $0x70] ss:$8 sps:$4 sm:$0xff]   ;;  %v3087_v27 = vld [vmem:[#allocation7 + $0x80] ss:$8 sps:$4 sm:$0xff]  }
 0x4f7   : > { %v1892_v10 = vpop.xlane.xlu0 %1891  ;;  %v3092_v35 = vld [vmem:[#allocation7 + $0x94] ss:$8 sps:$4 sm:$0xff]  }
 0x4f8   : > { %3139 = vpow2.f32 %v1886_v53  ;;  %v1888_v55 = vmul.f32 1.442695, %v1873_v59  ;;  %v3095_v53 = vld [vmem:[#allocation7 + $0xa4] ss:$8 sps:$4 sm:$0xff]   ;;  %v3093_v59 = vld [vmem:[#allocation7 + $0xa0] ss:$8 sps:$4 sm:$0xff]  }
 0x4f9   : > { %3141 = vrcp.f32 %v1892_v10  ;;  %v1895_v57 = vpop.xlane.xlu1 %1894  ;;  %v3098_v10 = vld [vmem:[#allocation7 + $0xb4] ss:$8 sps:$4 sm:$0xff]  }
 0x4fa   : > { %v3132_v2 = vpop.eup %3131  ;;  %3143 = vpow2.f32 %v1888_v55  ;;  %v3096_v55 = vld [vmem:[#allocation7 + $0xb0] ss:$8 sps:$4 sm:$0xff]  }
 0x4fb   : > { %3145 = vrcp.f32 %v1895_v57  ;;  %v1448_v28 = vpop.xlane.xlu0 %1447  ;;  %v1896_v18 = vsel %vm1397_vm1, %v3132_v2, 0.0  ;;  %v3101_v57 = vld [vmem:[#allocation7 + $0xc4] ss:$8 sps:$4 sm:$0xff]  }
 0x4fc   : > { %v3134_v20 = vpop.eup %3133  ;;  %3147 = vrcp.f32 %v1448_v28  ;;  %1897 = vadd.xlane.f32.xlu0 %v1896_v18  ;;  %v3104_v28 = vld [vmem:[#allocation7 + $0xd4] ss:$8 sps:$4 sm:$0xff]   ;;  %v3102_v18 = vld [vmem:[#allocation7 + $0xd0] ss:$8 sps:$4 sm:$0xff]  }
 0x4fd   : > { %v1451_v9 = vpop.xlane.xlu1 %1450  ;;  %v1899_v38 = vsel %vm1397_vm1, %v3134_v20, 0.0  ;;  %v1915_v46 = vpack.c.bf16 %v3134_v20, %v3132_v2  ;;  %v3099_v2 = vld [vmem:[#allocation7 + $0xc0] ss:$8 sps:$4 sm:$0xff]   ;;  %v3107_v20 = vld [vmem:[#allocation7 + $0xe4] ss:$8 sps:$4 sm:$0xff]  }
 0x4fe   : > { %3149 = vrcp.f32 %v1451_v9  ;;  %1900 = vadd.xlane.f32.xlu1 %v1899_v38  ;;  %v3136_v11 = vpop.eup %3135  ;;  %v3105_v9 = vld [vmem:[#allocation7 + $0xe0] ss:$8 sps:$4 sm:$0xff]   ;;  %v3110_v38 = vld [vmem:[#allocation7 + $0xf4] ss:$8 sps:$4 sm:$0xff]  }
 0x4ff   : > { %2807 = vmatmul.mubr.msk.bf16.vlgmr.msra.gmra.mrb[64].mxu1 %vm1397_vm1, %v1915_v46  ;;  %v1902_v48 = vsel %vm1397_vm1, %v3136_v11, 0.0  ;;  %v3108_v46 = vld [vmem:[#allocation7 + $0xf0] ss:$8 sps:$4 sm:$0xff]  }
 0x500   : > { %v3138_v8 = vpop.eup %3137  ;;  %2817 = vmatpush3.bf16.msra.mxu1 %v1216_v14  ;;  %1453 = vadd.xlane.f32.xlu0 %v1452_v26 }
 0x501   : > { %v1916_v12 = vpack.c.bf16 %v3138_v8, %v3136_v11  ;;  %2818 = vmatprep.mubr.msk.bf16.mxu1 %vm3374_vm0, %v3373_v40  ;;  %v1905_v14 = vsel %vm1397_vm1, %v3138_v8, 0.0 }
 0x502   : > { %v3140_v7 = vpop.eup %3139  ;;  %1456 = vadd.xlane.f32.xlu1 %v1455_v32 }
 0x503   : > { %v3142_v30 = vpop.eup %3141  ;;  %2813 = vmatmul.mubr.msk.bf16.vlgmr.msra.gmra.mrb[36].mxu0 %vm1397_vm1, %v1916_v12  ;;  %v1908_v60 = vsel %vm1397_vm1, %v3140_v7, 0.0 }
 0x504   : > { %v3144_v33 = vpop.eup %3143  ;;  %2319 = vmatpush1.bf16.msra.mxu0 %v3063_v29  ;;  %1903 = vadd.xlane.f32.xlu0 %v1902_v48  ;;  %v2102_v40 = vmul.f32 %v3142_v30, %v3964_v47 }
 0x505   : > { %v3146_v56 = vpop.eup %3145  ;;  %2320 = vmatprep.subr.bf16.mxu0 %v3068_v34  ;;  %v1917_v19 = vpack.c.bf16 %v3144_v33, %v3140_v7  ;;  %v1911_v63 = vsel %vm1397_vm1, %v3144_v33, 0.0 }
 0x506   : > { %v3148_v24 = vpop.eup %3147  ;;  %1906 = vadd.xlane.f32.xlu1 %v1905_v14  ;;  %v2103_v5 = vmul.f32 %v3146_v56, %v3966_v6 }
 0x507   : > { %2819 = vmatmul.mubr.msk.bf16.vlgmr.msra.gmra.mrb[68].mxu1 %vm1397_vm1, %v1917_v19  ;;  %v4013_v62 = vmul.f32 %v3148_v24, %v3948_v61  ;;  %v1464_v61 = vsel %vm1397_vm1, %v3907_v39, 0.0  ;;  %v3089_v39 = vld [vmem:[#allocation7 + $0x84] ss:$8 sps:$4 sm:$0xff]  }
 0x508   : > { %v3150_v13 = vpop.eup %3149  ;;  %2321 = vmatpush1.bf16.msra.mxu0 %v3066_v0  ;;  %1459 = vadd.xlane.f32.xlu0 %v1458_v4  ;;  %v2110_v22 = vpack.c.bf16 %v2103_v5, %v2102_v40 }
 0x509   : > { %2322 = vmatprep.subr.bf16.mxu0 %v3071_v36  ;;  %v4016_v47 = vmul.f32 %v3150_v13, %v3950_v3  ;;  %v3075_v3 = vld [vmem:[#allocation7 + $0x40] ss:$8 sps:$4 sm:$0xff]  }
 0x50a   : > { %2350 = vmatprep.mubr.bf16.mxu0 %v2110_v22  ;;  %1462 = vadd.xlane.f32.xlu1 %v1461_v51 }
 0x50b   : > { %v1666_v6 = vpack.c.bf16 %v4016_v47, %v4013_v62 }
 0x50c   : > { %2323 = vmatpush1.bf16.msra.mxu0 %v3069_v43  ;;  %1909 = vadd.xlane.f32.xlu0 %v1908_v60 }
 0x50d   : > { %2324 = vmatprep.subr.bf16.mxu0 %v3074_v58 }
 0x50e   : > { %1912 = vadd.xlane.f32.xlu1 %v1911_v63 }
 0x510   : > { %2325 = vmatpush1.bf16.msra.mxu0 %v3072_v49  ;;  %1465 = vadd.xlane.f32.xlu0 %v1464_v61 }
 0x511   : > { %2326 = vmatprep.subr.bf16.mxu0 %v3077_v1 }
 0x512   : > { %1468 = vadd.xlane.f32.xlu1 %v1467_v41 }
 0x514   : > { %2327 = vmatpush1.bf16.msra.mxu0 %v3075_v3 }
 0x515   : > { %2328 = vmatprep.subr.bf16.mxu0 %v3080_v54 }
 0x518   : > { %2329 = vmatpush1.bf16.msra.mxu0 %v3078_v52 }
 0x519   : > { %2330 = vmatprep.subr.bf16.mxu0 %v3083_v31 }
 0x51c   : > { %2331 = vmatpush1.bf16.msra.mxu0 %v3081_v21 }
 0x51d   : > { %2332 = vmatprep.subr.bf16.mxu0 %v3086_v16 }
 0x520   : > { %2333 = vmatpush1.bf16.msra.mxu0 %v3084_v15 }
 0x521   : > { %2334 = vmatprep.subr.bf16.mxu0 %v3089_v39 }
 0x524   : > { %2335 = vmatpush1.bf16.msra.mxu0 %v3087_v27 }
 0x525   : > { %2336 = vmatprep.subr.bf16.mxu0 %v3092_v35 }
 0x528   : > { %2337 = vmatpush1.bf16.msra.mxu0 %v3090_v45 }
 0x529   : > { %2338 = vmatprep.subr.bf16.mxu0 %v3095_v53 }
 0x52c   : > { %2339 = vmatpush1.bf16.msra.mxu0 %v3093_v59 }
 0x52d   : > { %2340 = vmatprep.subr.bf16.mxu0 %v3098_v10 }
 0x530   : > { %2341 = vmatpush1.bf16.msra.mxu0 %v3096_v55  ;;  %v2146_v55 = vld [vmem:[%s4113_s4] sm:$0x3] }
 0x531   : > { %2342 = vmatprep.subr.bf16.mxu0 %v3101_v57  ;;  %v4137_v57 = vsub.s32 0, %v3684_v42 }
 0x534   : > { %2343 = vmatpush1.bf16.msra.mxu0 %v3099_v2  ;;  %v2151_v2 = vrot.slane %v2146_v55, %v4137_v57 }
 0x535   : > { %2344 = vmatprep.subr.bf16.mxu0 %v3104_v28  ;;  %v4138_v28 = vsub.s32 1, %v3684_v42 }
 0x538   : > { %2345 = vmatpush1.bf16.msra.mxu0 %v3102_v18  ;;  %v2155_v18 = vrot.slane %v2146_v55, %v4138_v28 }
 0x539   : > { %2346 = vmatprep.subr.bf16.mxu0 %v3107_v20 }
 0x53c   : > { %2347 = vmatpush1.bf16.msra.mxu0 %v3105_v9 }
 0x53d   : > { %2348 = vmatprep.subr.bf16.mxu0 %v3110_v38 }
 0x540   : > { %2349 = vmatpush1.bf16.msra.mxu0 %v3108_v46 }
 0x543   : > { %2351 = vmatmul.mubr.bf16.vlgmr.msra.gmra.mrb[40].mxu0 %v1666_v6 }
 0x589   : > { %v1898_v11 = vpop.xlane.xlu0 %1897 }
 0x58b   : > { %v1901_v26 = vpop.xlane.xlu1 %1900 }
 0x58d   : > { %v1454_v8 = vpop.xlane.xlu0 %1453 }
 0x58e   : > { %3151 = vrcp.f32 %v1454_v8 }
 0x58f   : > { %v1457_v29 = vpop.xlane.xlu1 %1456 }
 0x590   : > { %3153 = vrcp.f32 %v1457_v29 }
 0x591   : > { %v1904_v32 = vpop.xlane.xlu0 %1903 }
 0x593   : > { %v1907_v12 = vpop.xlane.xlu1 %1906 }
 0x595   : > { %v1460_v34 = vpop.xlane.xlu0 %1459 }
 0x596   : > { %3155 = vrcp.f32 %v1460_v34 }
 0x597   : > { %v1463_v7 = vpop.xlane.xlu1 %1462 }
 0x598   : > { %v3152_v30 = vpop.eup %3151  ;;  %3157 = vrcp.f32 %v1463_v7 }
 0x599   : > { %v1910_v48 = vpop.xlane.xlu0 %1909  ;;  %v1660_v56 = vmul.f32 %v3152_v30, %v3952_v50 }
 0x59a   : > { %v3154_v33 = vpop.eup %3153 }
 0x59b   : > { %v1913_v0 = vpop.xlane.xlu1 %1912  ;;  %v1661_v14 = vmul.f32 %v3154_v33, %v3954_v17 }
 0x59d   : > { %v1466_v19 = vpop.xlane.xlu0 %1465  ;;  %v1667_v36 = vpack.c.bf16 %v1661_v14, %v1660_v56 }
 0x59e   : > { %3159 = vrcp.f32 %v1466_v19 }
 0x59f   : > { %v1469_v24 = vpop.xlane.xlu1 %1468 }
 0x5a0   : > { %v3156_v40 = vpop.eup %3155  ;;  %3161 = vrcp.f32 %v1469_v24 }
 0x5a1   : > { %v1662_v4 = vmul.f32 %v3156_v40, %v3956_v23  ;;  %3163 = vrcp.f32 %v1898_v11 }
 0x5a2   : > { %v3158_v5 = vpop.eup %3157  ;;  %3165 = vrcp.f32 %v1901_v26 }
 0x5a3   : > { %v1663_v13 = vmul.f32 %v3158_v5, %v3958_v25  ;;  %3167 = vrcp.f32 %v1904_v32 }
 0x5a4   : > { %3169 = vrcp.f32 %v1907_v12 }
 0x5a5   : > { %v1668_v22 = vpack.c.bf16 %v1663_v13, %v1662_v4  ;;  %3171 = vrcp.f32 %v1910_v48 }
 0x5a6   : > { %3173 = vrcp.f32 %v1913_v0 }
 0x5a8   : > { %v3160_v43 = vpop.eup %3159 }
 0x5a9   : > { %v1664_v58 = vmul.f32 %v3160_v43, %v3960_v44 }
 0x5aa   : > { %v3162_v51 = vpop.eup %3161 }
 0x5ab   : > { %v1665_v50 = vmul.f32 %v3162_v51, %v3962_v37  ;;  %v3164_v47 = vpop.eup %3163 }
 0x5ac   : > { %v3166_v23 = vpop.eup %3165 }
 0x5ad   : > { %v1669_v62 = vpack.c.bf16 %v1665_v50, %v1664_v58  ;;  %v3168_v61 = vpop.eup %3167 }
 0x5ae   : > { %v3170_v37 = vpop.eup %3169 }
 0x5af   : > { %v3172_v16 = vpop.eup %3171 }
 0x5b0   : > { %v3174_v27 = vpop.eup %3173 }
 0x5d2   : > { %v1999_v17 = vpop.f32.mrb[64].mxu1 }
 0x5d3   : > { %v2808_v60 = vpop.f32.mrb[65].mxu1  ;;  %v2104_v25 = vmul.f32 %v3164_v47, %v1999_v17 }
 0x5d4   : > { %v2002_v6 = vpop.f32.mrb[66].mxu1 }
 0x5d5   : > { %v2105_v49 = vmul.f32 %v3166_v23, %v2002_v6  ;;  %v2809_v63 = vpop.f32.mrb[67].mxu1 }
 0x5d6   : > { %v2043_v1 = vpop.f32.mrb[36].mxu0 }
 0x5d7   : > { %v2111_v44 = vpack.c.bf16 %v2105_v49, %v2104_v25  ;;  %v2814_v3 = vpop.f32.mrb[37].mxu0  ;;  %v2106_v54 = vmul.f32 %v3168_v61, %v2043_v1 }
 0x5d8   : > { %v2046_v41 = vpop.f32.mrb[38].mxu0 }
 0x5d9   : > { %v2107_v52 = vmul.f32 %v3170_v37, %v2046_v41  ;;  %v2815_v31 = vpop.f32.mrb[39].mxu0  ;;  %2360 = vmatprep.mubr.bf16.mxu0 %v2111_v44 }
 0x5da   : > { %v2087_v21 = vpop.f32.mrb[68].mxu1  ;;  %2361 = vmatmul.mubr.bf16.gmra.mrb[44].mxu0 %v1667_v36 }
 0x5db   : > { %v2112_v15 = vpack.c.bf16 %v2107_v52, %v2106_v54  ;;  %v2820_v39 = vpop.f32.mrb[69].mxu1  ;;  %v2108_v45 = vmul.f32 %v3172_v16, %v2087_v21 }
 0x5dc   : > { %v2090_v35 = vpop.f32.mrb[70].mxu1 }
 0x5dd   : > { %v2109_v53 = vmul.f32 %v3174_v27, %v2090_v35  ;;  %v2821_v59 = vpop.f32.mrb[71].mxu1  ;;  %2370 = vmatprep.mubr.bf16.mxu0 %v2112_v15 }
 0x5df   : > { %v2113_v10 = vpack.c.bf16 %v2109_v53, %v2108_v45 }
 0x5e2   : > { %2371 = vmatmul.mubr.bf16.gmra.mrb[48].mxu0 %v1668_v22 }
 0x5e3   : > { %2380 = vmatprep.mubr.bf16.mxu0 %v2113_v10 }
 0x5ea   : > { %2381 = vmatmul.mubr.bf16.gmra.mrb[52].mxu0 %v1669_v62 }
 0x616   : > { %v2352_v20 = vpop.f32.mrb[40].mxu0 }
 0x617   : > { %v2353_v9 = vadd.f32 %v2352_v20, %v2151_v2  ;;  %v2354_v38 = vpop.f32.mrb[41].mxu0 }
 0x618   : > { %v2355_v46 = vadd.f32 %v2354_v38, %v2155_v18  ;;  %v2356_v11 = vpop.f32.mrb[42].mxu0 }
 0x619   : > { %2391 = vst [vmem:[%s4040_s10] sm:$0xff] %v2353_v9  ;;  %v2357_v26 = vadd.f32 %v2356_v11, %v2151_v2  ;;  %v2358_v8 = vpop.f32.mrb[43].mxu0 }
 0x61a   : > { %2392 = vst [vmem:[%s4040_s10 + $0x8] sm:$0xff] %v2355_v46  ;;  %v2359_v42 = vadd.f32 %v2358_v8, %v2155_v18 }
 0x61b   : > { %2393 = vst [vmem:[%s4040_s10 + $0x10] sm:$0xff] %v2357_v26 }
 0x61c   : > { %2394 = vst [vmem:[%s4040_s10 + $0x18] sm:$0xff] %v2359_v42 }
 0x6ad   : > { %v2362_v29 = vpop.f32.mrb[44].mxu0 }
 0x6ae   : > { %v2363_v32 = vadd.f32 %v2362_v29, %v2151_v2  ;;  %v2364_v12 = vpop.f32.mrb[45].mxu0 }
 0x6af   : > { %v2365_v34 = vadd.f32 %v2364_v12, %v2155_v18  ;;  %v2366_v7 = vpop.f32.mrb[46].mxu0 }
 0x6b0   : > { %2395 = vst [vmem:[%s4040_s10 + $0x20] sm:$0xff] %v2363_v32  ;;  %v2367_v30 = vadd.f32 %v2366_v7, %v2151_v2  ;;  %v2368_v48 = vpop.f32.mrb[47].mxu0 }
 0x6b1   : > { %2396 = vst [vmem:[%s4040_s10 + $0x28] sm:$0xff] %v2365_v34  ;;  %v2369_v33 = vadd.f32 %v2368_v48, %v2155_v18 }
 0x6b2   : > { %2397 = vst [vmem:[%s4040_s10 + $0x30] sm:$0xff] %v2367_v30 }
 0x6b3   : > { %2398 = vst [vmem:[%s4040_s10 + $0x38] sm:$0xff] %v2369_v33 }
 0x6b5   : > { %v2372_v0 = vpop.f32.mrb[48].mxu0 }
 0x6b6   : > { %v2373_v56 = vadd.f32 %v2372_v0, %v2151_v2  ;;  %v2374_v14 = vpop.f32.mrb[49].mxu0 }
 0x6b7   : > { %v2375_v19 = vadd.f32 %v2374_v14, %v2155_v18  ;;  %v2376_v36 = vpop.f32.mrb[50].mxu0 }
 0x6b8   : > { %2399 = vst [vmem:[%s4040_s10 + $0x40] sm:$0xff] %v2373_v56  ;;  %v2377_v24 = vadd.f32 %v2376_v36, %v2151_v2  ;;  %v2378_v40 = vpop.f32.mrb[51].mxu0 }
 0x6b9   : > { %2400 = vst [vmem:[%s4040_s10 + $0x48] sm:$0xff] %v2375_v19  ;;  %v2379_v5 = vadd.f32 %v2378_v40, %v2155_v18 }
 0x6ba   : > { %2401 = vst [vmem:[%s4040_s10 + $0x50] sm:$0xff] %v2377_v24 }
 0x6bb   : > { %2402 = vst [vmem:[%s4040_s10 + $0x58] sm:$0xff] %v2379_v5 }
 0x6bd   : > { %v2382_v4 = vpop.f32.mrb[52].mxu0 }
 0x6be   : > { %v2383_v13 = vadd.f32 %v2382_v4, %v2151_v2  ;;  %v2384_v22 = vpop.f32.mrb[53].mxu0 }
 0x6bf   : > { %v2385_v43 = vadd.f32 %v2384_v22, %v2155_v18  ;;  %v2386_v51 = vpop.f32.mrb[54].mxu0 }
 0x6c0   : > { %2403 = vst [vmem:[%s4040_s10 + $0x60] sm:$0xff] %v2383_v13  ;;  %v2387_v58 = vadd.f32 %v2386_v51, %v2151_v2  ;;  %v2388_v50 = vpop.f32.mrb[55].mxu0 }
 0x6c1   : > { %2404 = vst [vmem:[%s4040_s10 + $0x68] sm:$0xff] %v2385_v43  ;;  %v2389_v62 = vadd.f32 %v2388_v50, %v2155_v18 }
 0x6c2   : > { %2405 = vst [vmem:[%s4040_s10 + $0x70] sm:$0xff] %v2387_v58 }
 0x6c3   : > { %2406 = vst [vmem:[%s4040_s10 + $0x78] sm:$0xff] %v2389_v62 }
 0x6c4   : > { %3302 = shalt.err (!%p3299_p4)
}
 0x6c5   : > { %s3303_s27 = scalar_lea.hbm %s4060_s8, 2048  ;;  %s3307_s20 = scalar_lea.hbm %s4115_s6, 4096 }
 0x6c6   : > { %p3304_p9 = scmp.ne.s32.totalorder %s4060_s8, %s3303_s27  ;;  %p3308_p8 = scmp.lt.u32.totalorder %s4060_s8, %s4115_s6 }
 0x6c7   : > { %p3309_p13 = scmp.lt.u32.totalorder %s3307_s20, %s3303_s27  ;;  %p3311_p10 = scmp.lt.u32.totalorder %s3303_s27, %s4060_s8 }
 0x6c8   : > { %p3305_p0 = pnand %p3304_p9, %p3561_p5 }
 0x6c9   : > { %p3310_p6 = por %p3309_p13, %p3308_p8 }
 0x6ca   : > { %p3306_p11 = pneg %p3305_p0 }
 0x6cb   : > { %p3312_p3 = por %p3311_p10, %p3310_p6 }
 0x6cd   : > { %p3313_p7 = pnand %p3312_p3, %p3306_p11 }
 0x6cf   : > { %3316 = shalt.err (!%p3313_p7)
}
 0x6d0   : > { %s3376_s1 = smov 256   ;;  %s3377_s13 = smov 16  }
 0x6d1   : > { %2836 = dma.vmem_to_hbm [thread:$0]  (%p3561_p5), %s4062_s26, 2048, %s4060_s8, %s2408_s25, %s3376_s1, %s3376_s1, %s3377_s13  }
 0x6d2 PF: > { %s2437_s7 = sand.u32 1, %s3351_s21   ;;  %p4139_p12 = scmp.ne.s32.totalorder %s4123_s28, 0 }
 0x6d3   : > { %p4140_p2 = scmp.ge.s32.totalorder %s3363_s24, 2  ;;  %s2438_s14 = scalar_lea.sflag [#allocation4], %s2437_s7 }
 0x6d5   : > { %p2853_p1 = pnand %p4140_p2, %p4139_p12 }
 0x6d7   : > { %3346 = dma.done.wait (!%p2853_p1), %s2438_s14, 2048  }
 0x6d8   : > { %3348 = vsyncadd (!%p2853_p1), %s2438_s14, 4294965248  ;;  %p21_p4 = scmp.ge.s32.totalorder %s3526_s12, 4   ;;  %s4141_s21 = smov %s3355_s22 }
 0x6d9   : > { %s4142_s22 = smov %s3359_s23  ;;  %s4143_s23 = smov %s3557_s30 }
 0x6da   : > { %s4144_s24 = smov %s3526_s12  ;;  %23 = sbr.rel (!%p21_p4) target bundleno = 9 (0x9), region = 101 }
 0x6e1   :  { %2443 = vsyncpa [#allocation3], 1 }
 0x6e2   :  { %2445 = vsyncpa [#allocation3 + $0x1], 1 }
 0x6e3   :  { %2446 = vsyncpa [#allocation6], 1 }
 0x6e4   :  { %2447 = vsyncpa [#allocation9], 1 }
 0x6e5   :  { %2448 = vsyncpa [#allocation4], 1 }
 0x6e6   :  { %2450 = vsyncpa [#allocation4 + $0x1], 1 }

</bundles_post_ra>
